<compile_context>
chip_gen: v5e
topology: v5e:2x2
jax: 0.10.0
libtpu: 0.0.40
codegen_flags: <defaults>
</compile_context>

<pallas_src>
import functools

import jax
import jax.numpy as jnp
from jax import lax
from jax.experimental import pallas as pl
from jax.experimental.pallas import tpu as pltpu  # noqa: F401  (kept for scratch/grid extensions)


def _round_up(n, m):
    return ((n + m - 1) // m) * m


# -----------------------------------------------------------------------------
# Fused kernel: summary MLP + num_layers x LSTM + head MLP
# -----------------------------------------------------------------------------
def _make_fused_kernel(T, B, H, num_layers, offs):
    G = 4 * H

    def kernel(x_ref, w_ref, o_ref):
        def wget(name):
            r0, nr, nc = offs[name]
            return w_ref[r0:r0 + nr, :nc]

        # ---- summary MLP over all B*T rows at once (batch-major rows b*T+t) ----
        x = x_ref[...]                                           # (B*T, D)
        s = jnp.maximum(
            jnp.dot(x, wget("w_s1"), preferred_element_type=jnp.float32)
            + wget("b_s1"), 0.0)
        seq = jnp.maximum(
            jnp.dot(s, wget("w_s2"), preferred_element_type=jnp.float32)
            + wget("b_s2"), 0.0)                                 # (B*T, 2)

        xs = None          # per-step (B,H) inputs for layers >= 1 (vreg-resident)
        h = None
        for l in range(num_layers):                              # layers unrolled
            wih = wget(f"wih{l}")                                # (in_dim, 4H)
            whh = wget(f"whh{l}")                                # (H, 4H)
            b = wget(f"b{l}")                                    # (1, 4H)
            b_full = jnp.broadcast_to(b, (B, G))                 # hoisted broadcast

            if l == 0:
                # Hoist the layer-0 input projection over all timesteps (one
                # matmul), then pre-split per step.  The splits depend only on
                # `seq`, so they sit off the recurrent critical path.
                gx = jnp.dot(seq, wih, preferred_element_type=jnp.float32) + b
                gx_t = [
                    jnp.concatenate(
                        [gx[bb * T + t:bb * T + t + 1, :] for bb in range(B)],
                        axis=0)
                    for t in range(T)
                ]                                                # T x (B, 4H)

            h = jnp.zeros((B, H), jnp.float32)
            c = jnp.zeros((B, H), jnp.float32)
            outs = []
            for t in range(T):                                   # fully unrolled
                if l == 0:
                    gates = gx_t[t] + jnp.dot(
                        h, whh, preferred_element_type=jnp.float32)
                else:
                    # Per-step input projection (one (B,H)x(H,4H) matmul) keeps
                    # this step dependent only on layer l-1 step t and layer l
                    # step t-1 -> wavefront-schedulable across layers.
                    gates = (jnp.dot(xs[t], wih,
                                     preferred_element_type=jnp.float32)
                             + b_full
                             + jnp.dot(h, whh,
                                       preferred_element_type=jnp.float32))
                # gate order (i, f, o, g): one sigmoid over 3H lanes, one tanh
                ifo = jax.nn.sigmoid(gates[:, :3 * H])
                g = jnp.tanh(gates[:, 3 * H:])
                c = ifo[:, H:2 * H] * c + ifo[:, :H] * g
                h = ifo[:, 2 * H:3 * H] * jnp.tanh(c)
                if l + 1 < num_layers:
                    outs.append(h)                               # vreg handoff
            xs = outs

        # ---- head MLP on hn[-1] ----
        z = jnp.maximum(h, 0.0)
        z = jnp.maximum(
            jnp.dot(z, wget("w_l1"), preferred_element_type=jnp.float32)
            + wget("b_l1"), 0.0)
        o_ref[...] = (jnp.dot(z, wget("w_l2"), preferred_element_type=jnp.float32)
                      + wget("b_l2"))

    return kernel


# -----------------------------------------------------------------------------
# Wrapper: single fused gridless pallas_call (2 operands: x rows + weight blob)
# -----------------------------------------------------------------------------
def model_forward(x, wblob, *, hidden_size, num_layers, out_size, offs):
    B, T, D = x.shape
    x2 = x.reshape(B * T, D)            # contiguous reshape (free), no transpose
    kernel = _make_fused_kernel(T, B, hidden_size, num_layers, offs)
    return pl.pallas_call(
        kernel,
        out_shape=jax.ShapeDtypeStruct((B, out_size), jnp.float32),
    )(x2, wblob)


# -----------------------------------------------------------------------------
# Parameter init (PyTorch-style uniform(-1/sqrt(fan), +1/sqrt(fan))).
# Linear weights stored as (in, out).  LSTM weights lane-packed as (in, 4H) /
# (H, 4H) / (1, 4H) with gate order (i, f, o, g); b = b_ih + b_hh.
# -----------------------------------------------------------------------------
def init_params(key, input_size, hidden_size, num_layers, out_size):
    H = hidden_size

    def lin(key, fan_in, fan_out):
        k1, k2 = jax.random.split(key)
        bound = 1.0 / jnp.sqrt(jnp.float32(fan_in))
        w = jax.random.uniform(k1, (fan_in, fan_out), jnp.float32, -bound, bound)
        b = jax.random.uniform(k2, (1, fan_out), jnp.float32, -bound, bound)
        return w, b

    keys = jax.random.split(key, 4 + num_layers)
    params = {}
    params["w_s1"], params["b_s1"] = lin(keys[0], input_size, 15)
    params["w_s2"], params["b_s2"] = lin(keys[1], 15, 2)
    params["w_l1"], params["b_l1"] = lin(keys[2], hidden_size, 50)
    params["w_l2"], params["b_l2"] = lin(keys[3], 50, out_size)

    lstm = []
    bound = 1.0 / jnp.sqrt(jnp.float32(hidden_size))
    for l in range(num_layers):
        in_dim = 2 if l == 0 else hidden_size
        k1, k2, k3, k4 = jax.random.split(keys[4 + l], 4)
        wih = jax.random.uniform(k1, (in_dim, 4 * H), jnp.float32, -bound, bound)
        whh = jax.random.uniform(k2, (H, 4 * H), jnp.float32, -bound, bound)
        b_ih = jax.random.uniform(k3, (1, 4 * H), jnp.float32, -bound, bound)
        b_hh = jax.random.uniform(k4, (1, 4 * H), jnp.float32, -bound, bound)
        lstm.append({"wih": wih, "whh": whh, "b": b_ih + b_hh})
    params["lstm"] = lstm
    return params


def pack_params(params, hidden_size):
    """Pack every weight/bias into ONE (rows, >=128)-lane f32 blob.  Done once
    at init time (never per forward call).  Each entry starts at an 8-row-
    aligned offset; offs[name] = (row_offset, n_rows, n_cols)."""
    width = max(128, 4 * hidden_size)
    entries = [("w_s1", params["w_s1"]), ("b_s1", params["b_s1"]),
               ("w_s2", params["w_s2"]), ("b_s2", params["b_s2"])]
    for l, p in enumerate(params["lstm"]):
        entries += [(f"wih{l}", p["wih"]), (f"whh{l}", p["whh"]), (f"b{l}", p["b"])]
    entries += [("w_l1", params["w_l1"]), ("b_l1", params["b_l1"]),
                ("w_l2", params["w_l2"]), ("b_l2", params["b_l2"])]

    offs = {}
    row = 0
    for name, a in entries:
        offs[name] = (row, int(a.shape[0]), int(a.shape[1]))
        row += _round_up(a.shape[0], 8)
    total_rows = _round_up(row, 8)

    blob = jnp.zeros((total_rows, width), jnp.float32)
    for name, a in entries:
        r0, nr, nc = offs[name]
        blob = blob.at[r0:r0 + nr, :nc].set(a)
    return blob, offs


# -----------------------------------------------------------------------------
# Pure-JAX reference (correctness check for the fused Pallas kernel)
# -----------------------------------------------------------------------------
def reference_forward(x, params):
    B, T, D = x.shape
    H = params["w_l1"].shape[0]

    s = jnp.maximum(x @ params["w_s1"] + params["b_s1"], 0.0)
    s = jnp.maximum(s @ params["w_s2"] + params["b_s2"], 0.0)
    seq = jnp.transpose(s, (1, 0, 2))                         # (T, B, 2)

    hT = None
    for p in params["lstm"]:
        def step(carry, x_t, p=p):
            h, c = carry
            gates = x_t @ p["wih"] + p["b"] + h @ p["whh"]    # (B,4H), order i,f,o,g
            i = jax.nn.sigmoid(gates[:, :H])
            f = jax.nn.sigmoid(gates[:, H:2 * H])
            o = jax.nn.sigmoid(gates[:, 2 * H:3 * H])
            g = jnp.tanh(gates[:, 3 * H:])
            c = f * c + i * g
            h = o * jnp.tanh(c)
            return (h, c), h

        h0 = jnp.zeros((B, H), jnp.float32)
        c0 = jnp.zeros((B, H), jnp.float32)
        (hT, _), ys = lax.scan(step, (h0, c0), seq)
        seq = ys

    out = jnp.maximum(hT, 0.0)
    out = jnp.maximum(out @ params["w_l1"] + params["b_l1"], 0.0)
    return out @ params["w_l2"] + params["b_l2"]


if __name__ == "__main__":
    # small shapes consistent with the module
    batch = 2
    seq_length = 8
    input_size = 8
    hidden_size = 32
    num_layers = 2
    out_size = 4

    key = jax.random.PRNGKey(0)
    kx, kp = jax.random.split(key)
    x = jax.random.normal(kx, (batch, seq_length, input_size), jnp.float32)
    params = init_params(kp, input_size, hidden_size, num_layers, out_size)
    wblob, offs = pack_params(params, hidden_size)            # once, at init

    fwd = jax.jit(functools.partial(model_forward, hidden_size=hidden_size,
                                    num_layers=num_layers, out_size=out_size,
                                    offs=offs))
    out = fwd(x, wblob)
    jax.block_until_ready(out)

    ref = reference_forward(x, params)
    assert out.shape == (batch, out_size)
    assert jnp.allclose(out, ref, atol=2e-4, rtol=2e-4), "mismatch vs reference"

    print("KERNEL_OK")
</pallas_src>

<mosaic_0001>
module attributes {stable_mosaic.version = 11 : i64} {
  func.func @kernel(%arg0: memref<16x8xf32, #tpu.memory_space<vmem>>, %arg1: memref<264x128xf32, #tpu.memory_space<vmem>>, %arg2: memref<2x4xf32, #tpu.memory_space<vmem>>) attributes {dimension_semantics = [], scalar_prefetch = 0 : i64, scratch_operands = 0 : i64, tpu.core_type = #tpu.core_type<tc>} {
    %c0 = arith.constant 0 : index
    %c0_0 = arith.constant 0 : index
    %0 = vector.load %arg0[%c0, %c0_0] : memref<16x8xf32, #tpu.memory_space<vmem>>, vector<16x8xf32>
    %c0_1 = arith.constant 0 : index
    %c0_2 = arith.constant 0 : index
    %1 = vector.load %arg1[%c0_1, %c0_2] : memref<264x128xf32, #tpu.memory_space<vmem>>, vector<8x15xf32>
    %cst = arith.constant dense<0.000000e+00> : vector<16x15xf32>
    %2 = tpu.matmul %0, %1, %cst {dimension_numbers = #tpu.dot_dimension_numbers<[1], [0], [0], [1], [0, 0, 1, 1], [], []>} : vector<16x8xf32>, vector<8x15xf32>, vector<16x15xf32> -> vector<16x15xf32>
    %c8 = arith.constant 8 : index
    %c0_3 = arith.constant 0 : index
    %3 = vector.load %arg1[%c8, %c0_3] : memref<264x128xf32, #tpu.memory_space<vmem>>, vector<1x15xf32>
    %4 = vector.broadcast %3 : vector<1x15xf32> to vector<16x15xf32>
    %5 = arith.addf %2, %4 : vector<16x15xf32>
    %cst_4 = arith.constant 0.000000e+00 : f32
    %6 = vector.broadcast %cst_4 : f32 to vector<16x15xf32>
    %7 = arith.maximumf %5, %6 : vector<16x15xf32>
    %c16 = arith.constant 16 : index
    %c0_5 = arith.constant 0 : index
    %8 = vector.load %arg1[%c16, %c0_5] : memref<264x128xf32, #tpu.memory_space<vmem>>, vector<15x2xf32>
    %cst_6 = arith.constant dense<0.000000e+00> : vector<16x2xf32>
    %9 = tpu.matmul %7, %8, %cst_6 {dimension_numbers = #tpu.dot_dimension_numbers<[1], [0], [0], [1], [0, 0, 1, 1], [], []>} : vector<16x15xf32>, vector<15x2xf32>, vector<16x2xf32> -> vector<16x2xf32>
    %c32 = arith.constant 32 : index
    %c0_7 = arith.constant 0 : index
    %10 = vector.load %arg1[%c32, %c0_7] : memref<264x128xf32, #tpu.memory_space<vmem>>, vector<1x2xf32>
    %11 = vector.broadcast %10 : vector<1x2xf32> to vector<16x2xf32>
    %12 = arith.addf %9, %11 : vector<16x2xf32>
    %cst_8 = arith.constant 0.000000e+00 : f32
    %13 = vector.broadcast %cst_8 : f32 to vector<16x2xf32>
    %14 = arith.maximumf %12, %13 : vector<16x2xf32>
    %c40 = arith.constant 40 : index
    %c0_9 = arith.constant 0 : index
    %15 = vector.load %arg1[%c40, %c0_9] : memref<264x128xf32, #tpu.memory_space<vmem>>, vector<2x128xf32>
    %c48 = arith.constant 48 : index
    %c0_10 = arith.constant 0 : index
    %16 = vector.load %arg1[%c48, %c0_10] : memref<264x128xf32, #tpu.memory_space<vmem>>, vector<32x128xf32>
    %c80 = arith.constant 80 : index
    %c0_11 = arith.constant 0 : index
    %17 = vector.load %arg1[%c80, %c0_11] : memref<264x128xf32, #tpu.memory_space<vmem>>, vector<1x128xf32>
    %cst_12 = arith.constant dense<0.000000e+00> : vector<16x128xf32>
    %18 = tpu.matmul %14, %15, %cst_12 {dimension_numbers = #tpu.dot_dimension_numbers<[1], [0], [0], [1], [0, 0, 1, 1], [], []>} : vector<16x2xf32>, vector<2x128xf32>, vector<16x128xf32> -> vector<16x128xf32>
    %19 = vector.broadcast %17 : vector<1x128xf32> to vector<16x128xf32>
    %20 = arith.addf %18, %19 : vector<16x128xf32>
    %21 = vector.extract_strided_slice %20 {offsets = [0, 0], sizes = [1, 128], strides = [1, 1]} : vector<16x128xf32> to vector<1x128xf32>
    %22 = vector.extract_strided_slice %20 {offsets = [8, 0], sizes = [1, 128], strides = [1, 1]} : vector<16x128xf32> to vector<1x128xf32>
    %23 = tpu.concatenate %21, %22 in 0 : vector<1x128xf32>, vector<1x128xf32> -> vector<2x128xf32>
    %24 = vector.extract_strided_slice %20 {offsets = [1, 0], sizes = [1, 128], strides = [1, 1]} : vector<16x128xf32> to vector<1x128xf32>
    %25 = vector.extract_strided_slice %20 {offsets = [9, 0], sizes = [1, 128], strides = [1, 1]} : vector<16x128xf32> to vector<1x128xf32>
    %26 = tpu.concatenate %24, %25 in 0 : vector<1x128xf32>, vector<1x128xf32> -> vector<2x128xf32>
    %27 = vector.extract_strided_slice %20 {offsets = [2, 0], sizes = [1, 128], strides = [1, 1]} : vector<16x128xf32> to vector<1x128xf32>
    %28 = vector.extract_strided_slice %20 {offsets = [10, 0], sizes = [1, 128], strides = [1, 1]} : vector<16x128xf32> to vector<1x128xf32>
    %29 = tpu.concatenate %27, %28 in 0 : vector<1x128xf32>, vector<1x128xf32> -> vector<2x128xf32>
    %30 = vector.extract_strided_slice %20 {offsets = [3, 0], sizes = [1, 128], strides = [1, 1]} : vector<16x128xf32> to vector<1x128xf32>
    %31 = vector.extract_strided_slice %20 {offsets = [11, 0], sizes = [1, 128], strides = [1, 1]} : vector<16x128xf32> to vector<1x128xf32>
    %32 = tpu.concatenate %30, %31 in 0 : vector<1x128xf32>, vector<1x128xf32> -> vector<2x128xf32>
    %33 = vector.extract_strided_slice %20 {offsets = [4, 0], sizes = [1, 128], strides = [1, 1]} : vector<16x128xf32> to vector<1x128xf32>
    %34 = vector.extract_strided_slice %20 {offsets = [12, 0], sizes = [1, 128], strides = [1, 1]} : vector<16x128xf32> to vector<1x128xf32>
    %35 = tpu.concatenate %33, %34 in 0 : vector<1x128xf32>, vector<1x128xf32> -> vector<2x128xf32>
    %36 = vector.extract_strided_slice %20 {offsets = [5, 0], sizes = [1, 128], strides = [1, 1]} : vector<16x128xf32> to vector<1x128xf32>
    %37 = vector.extract_strided_slice %20 {offsets = [13, 0], sizes = [1, 128], strides = [1, 1]} : vector<16x128xf32> to vector<1x128xf32>
    %38 = tpu.concatenate %36, %37 in 0 : vector<1x128xf32>, vector<1x128xf32> -> vector<2x128xf32>
    %39 = vector.extract_strided_slice %20 {offsets = [6, 0], sizes = [1, 128], strides = [1, 1]} : vector<16x128xf32> to vector<1x128xf32>
    %40 = vector.extract_strided_slice %20 {offsets = [14, 0], sizes = [1, 128], strides = [1, 1]} : vector<16x128xf32> to vector<1x128xf32>
    %41 = tpu.concatenate %39, %40 in 0 : vector<1x128xf32>, vector<1x128xf32> -> vector<2x128xf32>
    %42 = vector.extract_strided_slice %20 {offsets = [7, 0], sizes = [1, 128], strides = [1, 1]} : vector<16x128xf32> to vector<1x128xf32>
    %43 = vector.extract_strided_slice %20 {offsets = [15, 0], sizes = [1, 128], strides = [1, 1]} : vector<16x128xf32> to vector<1x128xf32>
    %44 = tpu.concatenate %42, %43 in 0 : vector<1x128xf32>, vector<1x128xf32> -> vector<2x128xf32>
    %cst_13 = arith.constant 0.000000e+00 : f32
    %45 = vector.broadcast %cst_13 : f32 to vector<2x32xf32>
    %cst_14 = arith.constant 0.000000e+00 : f32
    %46 = vector.broadcast %cst_14 : f32 to vector<2x32xf32>
    %cst_15 = arith.constant dense<0.000000e+00> : vector<2x128xf32>
    %47 = tpu.matmul %45, %16, %cst_15 {dimension_numbers = #tpu.dot_dimension_numbers<[1], [0], [0], [1], [0, 0, 1, 1], [], []>} : vector<2x32xf32>, vector<32x128xf32>, vector<2x128xf32> -> vector<2x128xf32>
    %48 = arith.addf %23, %47 : vector<2x128xf32>
    %49 = vector.extract_strided_slice %48 {offsets = [0, 0], sizes = [2, 96], strides = [1, 1]} : vector<2x128xf32> to vector<2x96xf32>
    %50 = arith.negf %49 : vector<2x96xf32>
    %51 = math.exp %50 : vector<2x96xf32>
    %cst_16 = arith.constant 1.000000e+00 : f32
    %52 = vector.broadcast %cst_16 : f32 to vector<2x96xf32>
    %53 = arith.addf %52, %51 : vector<2x96xf32>
    %54 = arith.divf %52, %53 : vector<2x96xf32>
    %55 = vector.extract_strided_slice %48 {offsets = [0, 96], sizes = [2, 32], strides = [1, 1]} : vector<2x128xf32> to vector<2x32xf32>
    %56 = math.tanh %55 : vector<2x32xf32>
    %57 = vector.extract_strided_slice %54 {offsets = [0, 32], sizes = [2, 32], strides = [1, 1]} : vector<2x96xf32> to vector<2x32xf32>
    %58 = arith.mulf %57, %46 : vector<2x32xf32>
    %59 = vector.extract_strided_slice %54 {offsets = [0, 0], sizes = [2, 32], strides = [1, 1]} : vector<2x96xf32> to vector<2x32xf32>
    %60 = arith.mulf %59, %56 : vector<2x32xf32>
    %61 = arith.addf %58, %60 : vector<2x32xf32>
    %62 = vector.extract_strided_slice %54 {offsets = [0, 64], sizes = [2, 32], strides = [1, 1]} : vector<2x96xf32> to vector<2x32xf32>
    %63 = math.tanh %61 : vector<2x32xf32>
    %64 = arith.mulf %62, %63 : vector<2x32xf32>
    %cst_17 = arith.constant dense<0.000000e+00> : vector<2x128xf32>
    %65 = tpu.matmul %64, %16, %cst_17 {dimension_numbers = #tpu.dot_dimension_numbers<[1], [0], [0], [1], [0, 0, 1, 1], [], []>} : vector<2x32xf32>, vector<32x128xf32>, vector<2x128xf32> -> vector<2x128xf32>
    %66 = arith.addf %26, %65 : vector<2x128xf32>
    %67 = vector.extract_strided_slice %66 {offsets = [0, 0], sizes = [2, 96], strides = [1, 1]} : vector<2x128xf32> to vector<2x96xf32>
    %68 = arith.negf %67 : vector<2x96xf32>
    %69 = math.exp %68 : vector<2x96xf32>
    %cst_18 = arith.constant 1.000000e+00 : f32
    %70 = vector.broadcast %cst_18 : f32 to vector<2x96xf32>
    %71 = arith.addf %70, %69 : vector<2x96xf32>
    %72 = arith.divf %70, %71 : vector<2x96xf32>
    %73 = vector.extract_strided_slice %66 {offsets = [0, 96], sizes = [2, 32], strides = [1, 1]} : vector<2x128xf32> to vector<2x32xf32>
    %74 = math.tanh %73 : vector<2x32xf32>
    %75 = vector.extract_strided_slice %72 {offsets = [0, 32], sizes = [2, 32], strides = [1, 1]} : vector<2x96xf32> to vector<2x32xf32>
    %76 = arith.mulf %75, %61 : vector<2x32xf32>
    %77 = vector.extract_strided_slice %72 {offsets = [0, 0], sizes = [2, 32], strides = [1, 1]} : vector<2x96xf32> to vector<2x32xf32>
    %78 = arith.mulf %77, %74 : vector<2x32xf32>
    %79 = arith.addf %76, %78 : vector<2x32xf32>
    %80 = vector.extract_strided_slice %72 {offsets = [0, 64], sizes = [2, 32], strides = [1, 1]} : vector<2x96xf32> to vector<2x32xf32>
    %81 = math.tanh %79 : vector<2x32xf32>
    %82 = arith.mulf %80, %81 : vector<2x32xf32>
    %cst_19 = arith.constant dense<0.000000e+00> : vector<2x128xf32>
    %83 = tpu.matmul %82, %16, %cst_19 {dimension_numbers = #tpu.dot_dimension_numbers<[1], [0], [0], [1], [0, 0, 1, 1], [], []>} : vector<2x32xf32>, vector<32x128xf32>, vector<2x128xf32> -> vector<2x128xf32>
    %84 = arith.addf %29, %83 : vector<2x128xf32>
    %85 = vector.extract_strided_slice %84 {offsets = [0, 0], sizes = [2, 96], strides = [1, 1]} : vector<2x128xf32> to vector<2x96xf32>
    %86 = arith.negf %85 : vector<2x96xf32>
    %87 = math.exp %86 : vector<2x96xf32>
    %cst_20 = arith.constant 1.000000e+00 : f32
    %88 = vector.broadcast %cst_20 : f32 to vector<2x96xf32>
    %89 = arith.addf %88, %87 : vector<2x96xf32>
    %90 = arith.divf %88, %89 : vector<2x96xf32>
    %91 = vector.extract_strided_slice %84 {offsets = [0, 96], sizes = [2, 32], strides = [1, 1]} : vector<2x128xf32> to vector<2x32xf32>
    %92 = math.tanh %91 : vector<2x32xf32>
    %93 = vector.extract_strided_slice %90 {offsets = [0, 32], sizes = [2, 32], strides = [1, 1]} : vector<2x96xf32> to vector<2x32xf32>
    %94 = arith.mulf %93, %79 : vector<2x32xf32>
    %95 = vector.extract_strided_slice %90 {offsets = [0, 0], sizes = [2, 32], strides = [1, 1]} : vector<2x96xf32> to vector<2x32xf32>
    %96 = arith.mulf %95, %92 : vector<2x32xf32>
    %97 = arith.addf %94, %96 : vector<2x32xf32>
    %98 = vector.extract_strided_slice %90 {offsets = [0, 64], sizes = [2, 32], strides = [1, 1]} : vector<2x96xf32> to vector<2x32xf32>
    %99 = math.tanh %97 : vector<2x32xf32>
    %100 = arith.mulf %98, %99 : vector<2x32xf32>
    %cst_21 = arith.constant dense<0.000000e+00> : vector<2x128xf32>
    %101 = tpu.matmul %100, %16, %cst_21 {dimension_numbers = #tpu.dot_dimension_numbers<[1], [0], [0], [1], [0, 0, 1, 1], [], []>} : vector<2x32xf32>, vector<32x128xf32>, vector<2x128xf32> -> vector<2x128xf32>
    %102 = arith.addf %32, %101 : vector<2x128xf32>
    %103 = vector.extract_strided_slice %102 {offsets = [0, 0], sizes = [2, 96], strides = [1, 1]} : vector<2x128xf32> to vector<2x96xf32>
    %104 = arith.negf %103 : vector<2x96xf32>
    %105 = math.exp %104 : vector<2x96xf32>
    %cst_22 = arith.constant 1.000000e+00 : f32
    %106 = vector.broadcast %cst_22 : f32 to vector<2x96xf32>
    %107 = arith.addf %106, %105 : vector<2x96xf32>
    %108 = arith.divf %106, %107 : vector<2x96xf32>
    %109 = vector.extract_strided_slice %102 {offsets = [0, 96], sizes = [2, 32], strides = [1, 1]} : vector<2x128xf32> to vector<2x32xf32>
    %110 = math.tanh %109 : vector<2x32xf32>
    %111 = vector.extract_strided_slice %108 {offsets = [0, 32], sizes = [2, 32], strides = [1, 1]} : vector<2x96xf32> to vector<2x32xf32>
    %112 = arith.mulf %111, %97 : vector<2x32xf32>
    %113 = vector.extract_strided_slice %108 {offsets = [0, 0], sizes = [2, 32], strides = [1, 1]} : vector<2x96xf32> to vector<2x32xf32>
    %114 = arith.mulf %113, %110 : vector<2x32xf32>
    %115 = arith.addf %112, %114 : vector<2x32xf32>
    %116 = vector.extract_strided_slice %108 {offsets = [0, 64], sizes = [2, 32], strides = [1, 1]} : vector<2x96xf32> to vector<2x32xf32>
    %117 = math.tanh %115 : vector<2x32xf32>
    %118 = arith.mulf %116, %117 : vector<2x32xf32>
    %cst_23 = arith.constant dense<0.000000e+00> : vector<2x128xf32>
    %119 = tpu.matmul %118, %16, %cst_23 {dimension_numbers = #tpu.dot_dimension_numbers<[1], [0], [0], [1], [0, 0, 1, 1], [], []>} : vector<2x32xf32>, vector<32x128xf32>, vector<2x128xf32> -> vector<2x128xf32>
    %120 = arith.addf %35, %119 : vector<2x128xf32>
    %121 = vector.extract_strided_slice %120 {offsets = [0, 0], sizes = [2, 96], strides = [1, 1]} : vector<2x128xf32> to vector<2x96xf32>
    %122 = arith.negf %121 : vector<2x96xf32>
    %123 = math.exp %122 : vector<2x96xf32>
    %cst_24 = arith.constant 1.000000e+00 : f32
    %124 = vector.broadcast %cst_24 : f32 to vector<2x96xf32>
    %125 = arith.addf %124, %123 : vector<2x96xf32>
    %126 = arith.divf %124, %125 : vector<2x96xf32>
    %127 = vector.extract_strided_slice %120 {offsets = [0, 96], sizes = [2, 32], strides = [1, 1]} : vector<2x128xf32> to vector<2x32xf32>
    %128 = math.tanh %127 : vector<2x32xf32>
    %129 = vector.extract_strided_slice %126 {offsets = [0, 32], sizes = [2, 32], strides = [1, 1]} : vector<2x96xf32> to vector<2x32xf32>
    %130 = arith.mulf %129, %115 : vector<2x32xf32>
    %131 = vector.extract_strided_slice %126 {offsets = [0, 0], sizes = [2, 32], strides = [1, 1]} : vector<2x96xf32> to vector<2x32xf32>
    %132 = arith.mulf %131, %128 : vector<2x32xf32>
    %133 = arith.addf %130, %132 : vector<2x32xf32>
    %134 = vector.extract_strided_slice %126 {offsets = [0, 64], sizes = [2, 32], strides = [1, 1]} : vector<2x96xf32> to vector<2x32xf32>
    %135 = math.tanh %133 : vector<2x32xf32>
    %136 = arith.mulf %134, %135 : vector<2x32xf32>
    %cst_25 = arith.constant dense<0.000000e+00> : vector<2x128xf32>
    %137 = tpu.matmul %136, %16, %cst_25 {dimension_numbers = #tpu.dot_dimension_numbers<[1], [0], [0], [1], [0, 0, 1, 1], [], []>} : vector<2x32xf32>, vector<32x128xf32>, vector<2x128xf32> -> vector<2x128xf32>
    %138 = arith.addf %38, %137 : vector<2x128xf32>
    %139 = vector.extract_strided_slice %138 {offsets = [0, 0], sizes = [2, 96], strides = [1, 1]} : vector<2x128xf32> to vector<2x96xf32>
    %140 = arith.negf %139 : vector<2x96xf32>
    %141 = math.exp %140 : vector<2x96xf32>
    %cst_26 = arith.constant 1.000000e+00 : f32
    %142 = vector.broadcast %cst_26 : f32 to vector<2x96xf32>
    %143 = arith.addf %142, %141 : vector<2x96xf32>
    %144 = arith.divf %142, %143 : vector<2x96xf32>
    %145 = vector.extract_strided_slice %138 {offsets = [0, 96], sizes = [2, 32], strides = [1, 1]} : vector<2x128xf32> to vector<2x32xf32>
    %146 = math.tanh %145 : vector<2x32xf32>
    %147 = vector.extract_strided_slice %144 {offsets = [0, 32], sizes = [2, 32], strides = [1, 1]} : vector<2x96xf32> to vector<2x32xf32>
    %148 = arith.mulf %147, %133 : vector<2x32xf32>
    %149 = vector.extract_strided_slice %144 {offsets = [0, 0], sizes = [2, 32], strides = [1, 1]} : vector<2x96xf32> to vector<2x32xf32>
    %150 = arith.mulf %149, %146 : vector<2x32xf32>
    %151 = arith.addf %148, %150 : vector<2x32xf32>
    %152 = vector.extract_strided_slice %144 {offsets = [0, 64], sizes = [2, 32], strides = [1, 1]} : vector<2x96xf32> to vector<2x32xf32>
    %153 = math.tanh %151 : vector<2x32xf32>
    %154 = arith.mulf %152, %153 : vector<2x32xf32>
    %cst_27 = arith.constant dense<0.000000e+00> : vector<2x128xf32>
    %155 = tpu.matmul %154, %16, %cst_27 {dimension_numbers = #tpu.dot_dimension_numbers<[1], [0], [0], [1], [0, 0, 1, 1], [], []>} : vector<2x32xf32>, vector<32x128xf32>, vector<2x128xf32> -> vector<2x128xf32>
    %156 = arith.addf %41, %155 : vector<2x128xf32>
    %157 = vector.extract_strided_slice %156 {offsets = [0, 0], sizes = [2, 96], strides = [1, 1]} : vector<2x128xf32> to vector<2x96xf32>
    %158 = arith.negf %157 : vector<2x96xf32>
    %159 = math.exp %158 : vector<2x96xf32>
    %cst_28 = arith.constant 1.000000e+00 : f32
    %160 = vector.broadcast %cst_28 : f32 to vector<2x96xf32>
    %161 = arith.addf %160, %159 : vector<2x96xf32>
    %162 = arith.divf %160, %161 : vector<2x96xf32>
    %163 = vector.extract_strided_slice %156 {offsets = [0, 96], sizes = [2, 32], strides = [1, 1]} : vector<2x128xf32> to vector<2x32xf32>
    %164 = math.tanh %163 : vector<2x32xf32>
    %165 = vector.extract_strided_slice %162 {offsets = [0, 32], sizes = [2, 32], strides = [1, 1]} : vector<2x96xf32> to vector<2x32xf32>
    %166 = arith.mulf %165, %151 : vector<2x32xf32>
    %167 = vector.extract_strided_slice %162 {offsets = [0, 0], sizes = [2, 32], strides = [1, 1]} : vector<2x96xf32> to vector<2x32xf32>
    %168 = arith.mulf %167, %164 : vector<2x32xf32>
    %169 = arith.addf %166, %168 : vector<2x32xf32>
    %170 = vector.extract_strided_slice %162 {offsets = [0, 64], sizes = [2, 32], strides = [1, 1]} : vector<2x96xf32> to vector<2x32xf32>
    %171 = math.tanh %169 : vector<2x32xf32>
    %172 = arith.mulf %170, %171 : vector<2x32xf32>
    %cst_29 = arith.constant dense<0.000000e+00> : vector<2x128xf32>
    %173 = tpu.matmul %172, %16, %cst_29 {dimension_numbers = #tpu.dot_dimension_numbers<[1], [0], [0], [1], [0, 0, 1, 1], [], []>} : vector<2x32xf32>, vector<32x128xf32>, vector<2x128xf32> -> vector<2x128xf32>
    %174 = arith.addf %44, %173 : vector<2x128xf32>
    %175 = vector.extract_strided_slice %174 {offsets = [0, 0], sizes = [2, 96], strides = [1, 1]} : vector<2x128xf32> to vector<2x96xf32>
    %176 = arith.negf %175 : vector<2x96xf32>
    %177 = math.exp %176 : vector<2x96xf32>
    %cst_30 = arith.constant 1.000000e+00 : f32
    %178 = vector.broadcast %cst_30 : f32 to vector<2x96xf32>
    %179 = arith.addf %178, %177 : vector<2x96xf32>
    %180 = arith.divf %178, %179 : vector<2x96xf32>
    %181 = vector.extract_strided_slice %174 {offsets = [0, 96], sizes = [2, 32], strides = [1, 1]} : vector<2x128xf32> to vector<2x32xf32>
    %182 = math.tanh %181 : vector<2x32xf32>
    %183 = vector.extract_strided_slice %180 {offsets = [0, 32], sizes = [2, 32], strides = [1, 1]} : vector<2x96xf32> to vector<2x32xf32>
    %184 = arith.mulf %183, %169 : vector<2x32xf32>
    %185 = vector.extract_strided_slice %180 {offsets = [0, 0], sizes = [2, 32], strides = [1, 1]} : vector<2x96xf32> to vector<2x32xf32>
    %186 = arith.mulf %185, %182 : vector<2x32xf32>
    %187 = arith.addf %184, %186 : vector<2x32xf32>
    %188 = vector.extract_strided_slice %180 {offsets = [0, 64], sizes = [2, 32], strides = [1, 1]} : vector<2x96xf32> to vector<2x32xf32>
    %189 = math.tanh %187 : vector<2x32xf32>
    %190 = arith.mulf %188, %189 : vector<2x32xf32>
    %c88 = arith.constant 88 : index
    %c0_31 = arith.constant 0 : index
    %191 = vector.load %arg1[%c88, %c0_31] : memref<264x128xf32, #tpu.memory_space<vmem>>, vector<32x128xf32>
    %c120 = arith.constant 120 : index
    %c0_32 = arith.constant 0 : index
    %192 = vector.load %arg1[%c120, %c0_32] : memref<264x128xf32, #tpu.memory_space<vmem>>, vector<32x128xf32>
    %c152 = arith.constant 152 : index
    %c0_33 = arith.constant 0 : index
    %193 = vector.load %arg1[%c152, %c0_33] : memref<264x128xf32, #tpu.memory_space<vmem>>, vector<1x128xf32>
    %194 = vector.shape_cast %193 : vector<1x128xf32> to vector<1x128xf32>
    %195 = vector.broadcast %194 : vector<1x128xf32> to vector<2x128xf32>
    %cst_34 = arith.constant 0.000000e+00 : f32
    %196 = vector.broadcast %cst_34 : f32 to vector<2x32xf32>
    %cst_35 = arith.constant 0.000000e+00 : f32
    %197 = vector.broadcast %cst_35 : f32 to vector<2x32xf32>
    %cst_36 = arith.constant dense<0.000000e+00> : vector<2x128xf32>
    %198 = tpu.matmul %64, %191, %cst_36 {dimension_numbers = #tpu.dot_dimension_numbers<[1], [0], [0], [1], [0, 0, 1, 1], [], []>} : vector<2x32xf32>, vector<32x128xf32>, vector<2x128xf32> -> vector<2x128xf32>
    %199 = arith.addf %198, %195 : vector<2x128xf32>
    %cst_37 = arith.constant dense<0.000000e+00> : vector<2x128xf32>
    %200 = tpu.matmul %196, %192, %cst_37 {dimension_numbers = #tpu.dot_dimension_numbers<[1], [0], [0], [1], [0, 0, 1, 1], [], []>} : vector<2x32xf32>, vector<32x128xf32>, vector<2x128xf32> -> vector<2x128xf32>
    %201 = arith.addf %199, %200 : vector<2x128xf32>
    %202 = vector.extract_strided_slice %201 {offsets = [0, 0], sizes = [2, 96], strides = [1, 1]} : vector<2x128xf32> to vector<2x96xf32>
    %203 = arith.negf %202 : vector<2x96xf32>
    %204 = math.exp %203 : vector<2x96xf32>
    %cst_38 = arith.constant 1.000000e+00 : f32
    %205 = vector.broadcast %cst_38 : f32 to vector<2x96xf32>
    %206 = arith.addf %205, %204 : vector<2x96xf32>
    %207 = arith.divf %205, %206 : vector<2x96xf32>
    %208 = vector.extract_strided_slice %201 {offsets = [0, 96], sizes = [2, 32], strides = [1, 1]} : vector<2x128xf32> to vector<2x32xf32>
    %209 = math.tanh %208 : vector<2x32xf32>
    %210 = vector.extract_strided_slice %207 {offsets = [0, 32], sizes = [2, 32], strides = [1, 1]} : vector<2x96xf32> to vector<2x32xf32>
    %211 = arith.mulf %210, %197 : vector<2x32xf32>
    %212 = vector.extract_strided_slice %207 {offsets = [0, 0], sizes = [2, 32], strides = [1, 1]} : vector<2x96xf32> to vector<2x32xf32>
    %213 = arith.mulf %212, %209 : vector<2x32xf32>
    %214 = arith.addf %211, %213 : vector<2x32xf32>
    %215 = vector.extract_strided_slice %207 {offsets = [0, 64], sizes = [2, 32], strides = [1, 1]} : vector<2x96xf32> to vector<2x32xf32>
    %216 = math.tanh %214 : vector<2x32xf32>
    %217 = arith.mulf %215, %216 : vector<2x32xf32>
    %cst_39 = arith.constant dense<0.000000e+00> : vector<2x128xf32>
    %218 = tpu.matmul %82, %191, %cst_39 {dimension_numbers = #tpu.dot_dimension_numbers<[1], [0], [0], [1], [0, 0, 1, 1], [], []>} : vector<2x32xf32>, vector<32x128xf32>, vector<2x128xf32> -> vector<2x128xf32>
    %219 = arith.addf %218, %195 : vector<2x128xf32>
    %cst_40 = arith.constant dense<0.000000e+00> : vector<2x128xf32>
    %220 = tpu.matmul %217, %192, %cst_40 {dimension_numbers = #tpu.dot_dimension_numbers<[1], [0], [0], [1], [0, 0, 1, 1], [], []>} : vector<2x32xf32>, vector<32x128xf32>, vector<2x128xf32> -> vector<2x128xf32>
    %221 = arith.addf %219, %220 : vector<2x128xf32>
    %222 = vector.extract_strided_slice %221 {offsets = [0, 0], sizes = [2, 96], strides = [1, 1]} : vector<2x128xf32> to vector<2x96xf32>
    %223 = arith.negf %222 : vector<2x96xf32>
    %224 = math.exp %223 : vector<2x96xf32>
    %cst_41 = arith.constant 1.000000e+00 : f32
    %225 = vector.broadcast %cst_41 : f32 to vector<2x96xf32>
    %226 = arith.addf %225, %224 : vector<2x96xf32>
    %227 = arith.divf %225, %226 : vector<2x96xf32>
    %228 = vector.extract_strided_slice %221 {offsets = [0, 96], sizes = [2, 32], strides = [1, 1]} : vector<2x128xf32> to vector<2x32xf32>
    %229 = math.tanh %228 : vector<2x32xf32>
    %230 = vector.extract_strided_slice %227 {offsets = [0, 32], sizes = [2, 32], strides = [1, 1]} : vector<2x96xf32> to vector<2x32xf32>
    %231 = arith.mulf %230, %214 : vector<2x32xf32>
    %232 = vector.extract_strided_slice %227 {offsets = [0, 0], sizes = [2, 32], strides = [1, 1]} : vector<2x96xf32> to vector<2x32xf32>
    %233 = arith.mulf %232, %229 : vector<2x32xf32>
    %234 = arith.addf %231, %233 : vector<2x32xf32>
    %235 = vector.extract_strided_slice %227 {offsets = [0, 64], sizes = [2, 32], strides = [1, 1]} : vector<2x96xf32> to vector<2x32xf32>
    %236 = math.tanh %234 : vector<2x32xf32>
    %237 = arith.mulf %235, %236 : vector<2x32xf32>
    %cst_42 = arith.constant dense<0.000000e+00> : vector<2x128xf32>
    %238 = tpu.matmul %100, %191, %cst_42 {dimension_numbers = #tpu.dot_dimension_numbers<[1], [0], [0], [1], [0, 0, 1, 1], [], []>} : vector<2x32xf32>, vector<32x128xf32>, vector<2x128xf32> -> vector<2x128xf32>
    %239 = arith.addf %238, %195 : vector<2x128xf32>
    %cst_43 = arith.constant dense<0.000000e+00> : vector<2x128xf32>
    %240 = tpu.matmul %237, %192, %cst_43 {dimension_numbers = #tpu.dot_dimension_numbers<[1], [0], [0], [1], [0, 0, 1, 1], [], []>} : vector<2x32xf32>, vector<32x128xf32>, vector<2x128xf32> -> vector<2x128xf32>
    %241 = arith.addf %239, %240 : vector<2x128xf32>
    %242 = vector.extract_strided_slice %241 {offsets = [0, 0], sizes = [2, 96], strides = [1, 1]} : vector<2x128xf32> to vector<2x96xf32>
    %243 = arith.negf %242 : vector<2x96xf32>
    %244 = math.exp %243 : vector<2x96xf32>
    %cst_44 = arith.constant 1.000000e+00 : f32
    %245 = vector.broadcast %cst_44 : f32 to vector<2x96xf32>
    %246 = arith.addf %245, %244 : vector<2x96xf32>
    %247 = arith.divf %245, %246 : vector<2x96xf32>
    %248 = vector.extract_strided_slice %241 {offsets = [0, 96], sizes = [2, 32], strides = [1, 1]} : vector<2x128xf32> to vector<2x32xf32>
    %249 = math.tanh %248 : vector<2x32xf32>
    %250 = vector.extract_strided_slice %247 {offsets = [0, 32], sizes = [2, 32], strides = [1, 1]} : vector<2x96xf32> to vector<2x32xf32>
    %251 = arith.mulf %250, %234 : vector<2x32xf32>
    %252 = vector.extract_strided_slice %247 {offsets = [0, 0], sizes = [2, 32], strides = [1, 1]} : vector<2x96xf32> to vector<2x32xf32>
    %253 = arith.mulf %252, %249 : vector<2x32xf32>
    %254 = arith.addf %251, %253 : vector<2x32xf32>
    %255 = vector.extract_strided_slice %247 {offsets = [0, 64], sizes = [2, 32], strides = [1, 1]} : vector<2x96xf32> to vector<2x32xf32>
    %256 = math.tanh %254 : vector<2x32xf32>
    %257 = arith.mulf %255, %256 : vector<2x32xf32>
    %cst_45 = arith.constant dense<0.000000e+00> : vector<2x128xf32>
    %258 = tpu.matmul %118, %191, %cst_45 {dimension_numbers = #tpu.dot_dimension_numbers<[1], [0], [0], [1], [0, 0, 1, 1], [], []>} : vector<2x32xf32>, vector<32x128xf32>, vector<2x128xf32> -> vector<2x128xf32>
    %259 = arith.addf %258, %195 : vector<2x128xf32>
    %cst_46 = arith.constant dense<0.000000e+00> : vector<2x128xf32>
    %260 = tpu.matmul %257, %192, %cst_46 {dimension_numbers = #tpu.dot_dimension_numbers<[1], [0], [0], [1], [0, 0, 1, 1], [], []>} : vector<2x32xf32>, vector<32x128xf32>, vector<2x128xf32> -> vector<2x128xf32>
    %261 = arith.addf %259, %260 : vector<2x128xf32>
    %262 = vector.extract_strided_slice %261 {offsets = [0, 0], sizes = [2, 96], strides = [1, 1]} : vector<2x128xf32> to vector<2x96xf32>
    %263 = arith.negf %262 : vector<2x96xf32>
    %264 = math.exp %263 : vector<2x96xf32>
    %cst_47 = arith.constant 1.000000e+00 : f32
    %265 = vector.broadcast %cst_47 : f32 to vector<2x96xf32>
    %266 = arith.addf %265, %264 : vector<2x96xf32>
    %267 = arith.divf %265, %266 : vector<2x96xf32>
    %268 = vector.extract_strided_slice %261 {offsets = [0, 96], sizes = [2, 32], strides = [1, 1]} : vector<2x128xf32> to vector<2x32xf32>
    %269 = math.tanh %268 : vector<2x32xf32>
    %270 = vector.extract_strided_slice %267 {offsets = [0, 32], sizes = [2, 32], strides = [1, 1]} : vector<2x96xf32> to vector<2x32xf32>
    %271 = arith.mulf %270, %254 : vector<2x32xf32>
    %272 = vector.extract_strided_slice %267 {offsets = [0, 0], sizes = [2, 32], strides = [1, 1]} : vector<2x96xf32> to vector<2x32xf32>
    %273 = arith.mulf %272, %269 : vector<2x32xf32>
    %274 = arith.addf %271, %273 : vector<2x32xf32>
    %275 = vector.extract_strided_slice %267 {offsets = [0, 64], sizes = [2, 32], strides = [1, 1]} : vector<2x96xf32> to vector<2x32xf32>
    %276 = math.tanh %274 : vector<2x32xf32>
    %277 = arith.mulf %275, %276 : vector<2x32xf32>
    %cst_48 = arith.constant dense<0.000000e+00> : vector<2x128xf32>
    %278 = tpu.matmul %136, %191, %cst_48 {dimension_numbers = #tpu.dot_dimension_numbers<[1], [0], [0], [1], [0, 0, 1, 1], [], []>} : vector<2x32xf32>, vector<32x128xf32>, vector<2x128xf32> -> vector<2x128xf32>
    %279 = arith.addf %278, %195 : vector<2x128xf32>
    %cst_49 = arith.constant dense<0.000000e+00> : vector<2x128xf32>
    %280 = tpu.matmul %277, %192, %cst_49 {dimension_numbers = #tpu.dot_dimension_numbers<[1], [0], [0], [1], [0, 0, 1, 1], [], []>} : vector<2x32xf32>, vector<32x128xf32>, vector<2x128xf32> -> vector<2x128xf32>
    %281 = arith.addf %279, %280 : vector<2x128xf32>
    %282 = vector.extract_strided_slice %281 {offsets = [0, 0], sizes = [2, 96], strides = [1, 1]} : vector<2x128xf32> to vector<2x96xf32>
    %283 = arith.negf %282 : vector<2x96xf32>
    %284 = math.exp %283 : vector<2x96xf32>
    %cst_50 = arith.constant 1.000000e+00 : f32
    %285 = vector.broadcast %cst_50 : f32 to vector<2x96xf32>
    %286 = arith.addf %285, %284 : vector<2x96xf32>
    %287 = arith.divf %285, %286 : vector<2x96xf32>
    %288 = vector.extract_strided_slice %281 {offsets = [0, 96], sizes = [2, 32], strides = [1, 1]} : vector<2x128xf32> to vector<2x32xf32>
    %289 = math.tanh %288 : vector<2x32xf32>
    %290 = vector.extract_strided_slice %287 {offsets = [0, 32], sizes = [2, 32], strides = [1, 1]} : vector<2x96xf32> to vector<2x32xf32>
    %291 = arith.mulf %290, %274 : vector<2x32xf32>
    %292 = vector.extract_strided_slice %287 {offsets = [0, 0], sizes = [2, 32], strides = [1, 1]} : vector<2x96xf32> to vector<2x32xf32>
    %293 = arith.mulf %292, %289 : vector<2x32xf32>
    %294 = arith.addf %291, %293 : vector<2x32xf32>
    %295 = vector.extract_strided_slice %287 {offsets = [0, 64], sizes = [2, 32], strides = [1, 1]} : vector<2x96xf32> to vector<2x32xf32>
    %296 = math.tanh %294 : vector<2x32xf32>
    %297 = arith.mulf %295, %296 : vector<2x32xf32>
    %cst_51 = arith.constant dense<0.000000e+00> : vector<2x128xf32>
    %298 = tpu.matmul %154, %191, %cst_51 {dimension_numbers = #tpu.dot_dimension_numbers<[1], [0], [0], [1], [0, 0, 1, 1], [], []>} : vector<2x32xf32>, vector<32x128xf32>, vector<2x128xf32> -> vector<2x128xf32>
    %299 = arith.addf %298, %195 : vector<2x128xf32>
    %cst_52 = arith.constant dense<0.000000e+00> : vector<2x128xf32>
    %300 = tpu.matmul %297, %192, %cst_52 {dimension_numbers = #tpu.dot_dimension_numbers<[1], [0], [0], [1], [0, 0, 1, 1], [], []>} : vector<2x32xf32>, vector<32x128xf32>, vector<2x128xf32> -> vector<2x128xf32>
    %301 = arith.addf %299, %300 : vector<2x128xf32>
    %302 = vector.extract_strided_slice %301 {offsets = [0, 0], sizes = [2, 96], strides = [1, 1]} : vector<2x128xf32> to vector<2x96xf32>
    %303 = arith.negf %302 : vector<2x96xf32>
    %304 = math.exp %303 : vector<2x96xf32>
    %cst_53 = arith.constant 1.000000e+00 : f32
    %305 = vector.broadcast %cst_53 : f32 to vector<2x96xf32>
    %306 = arith.addf %305, %304 : vector<2x96xf32>
    %307 = arith.divf %305, %306 : vector<2x96xf32>
    %308 = vector.extract_strided_slice %301 {offsets = [0, 96], sizes = [2, 32], strides = [1, 1]} : vector<2x128xf32> to vector<2x32xf32>
    %309 = math.tanh %308 : vector<2x32xf32>
    %310 = vector.extract_strided_slice %307 {offsets = [0, 32], sizes = [2, 32], strides = [1, 1]} : vector<2x96xf32> to vector<2x32xf32>
    %311 = arith.mulf %310, %294 : vector<2x32xf32>
    %312 = vector.extract_strided_slice %307 {offsets = [0, 0], sizes = [2, 32], strides = [1, 1]} : vector<2x96xf32> to vector<2x32xf32>
    %313 = arith.mulf %312, %309 : vector<2x32xf32>
    %314 = arith.addf %311, %313 : vector<2x32xf32>
    %315 = vector.extract_strided_slice %307 {offsets = [0, 64], sizes = [2, 32], strides = [1, 1]} : vector<2x96xf32> to vector<2x32xf32>
    %316 = math.tanh %314 : vector<2x32xf32>
    %317 = arith.mulf %315, %316 : vector<2x32xf32>
    %cst_54 = arith.constant dense<0.000000e+00> : vector<2x128xf32>
    %318 = tpu.matmul %172, %191, %cst_54 {dimension_numbers = #tpu.dot_dimension_numbers<[1], [0], [0], [1], [0, 0, 1, 1], [], []>} : vector<2x32xf32>, vector<32x128xf32>, vector<2x128xf32> -> vector<2x128xf32>
    %319 = arith.addf %318, %195 : vector<2x128xf32>
    %cst_55 = arith.constant dense<0.000000e+00> : vector<2x128xf32>
    %320 = tpu.matmul %317, %192, %cst_55 {dimension_numbers = #tpu.dot_dimension_numbers<[1], [0], [0], [1], [0, 0, 1, 1], [], []>} : vector<2x32xf32>, vector<32x128xf32>, vector<2x128xf32> -> vector<2x128xf32>
    %321 = arith.addf %319, %320 : vector<2x128xf32>
    %322 = vector.extract_strided_slice %321 {offsets = [0, 0], sizes = [2, 96], strides = [1, 1]} : vector<2x128xf32> to vector<2x96xf32>
    %323 = arith.negf %322 : vector<2x96xf32>
    %324 = math.exp %323 : vector<2x96xf32>
    %cst_56 = arith.constant 1.000000e+00 : f32
    %325 = vector.broadcast %cst_56 : f32 to vector<2x96xf32>
    %326 = arith.addf %325, %324 : vector<2x96xf32>
    %327 = arith.divf %325, %326 : vector<2x96xf32>
    %328 = vector.extract_strided_slice %321 {offsets = [0, 96], sizes = [2, 32], strides = [1, 1]} : vector<2x128xf32> to vector<2x32xf32>
    %329 = math.tanh %328 : vector<2x32xf32>
    %330 = vector.extract_strided_slice %327 {offsets = [0, 32], sizes = [2, 32], strides = [1, 1]} : vector<2x96xf32> to vector<2x32xf32>
    %331 = arith.mulf %330, %314 : vector<2x32xf32>
    %332 = vector.extract_strided_slice %327 {offsets = [0, 0], sizes = [2, 32], strides = [1, 1]} : vector<2x96xf32> to vector<2x32xf32>
    %333 = arith.mulf %332, %329 : vector<2x32xf32>
    %334 = arith.addf %331, %333 : vector<2x32xf32>
    %335 = vector.extract_strided_slice %327 {offsets = [0, 64], sizes = [2, 32], strides = [1, 1]} : vector<2x96xf32> to vector<2x32xf32>
    %336 = math.tanh %334 : vector<2x32xf32>
    %337 = arith.mulf %335, %336 : vector<2x32xf32>
    %cst_57 = arith.constant dense<0.000000e+00> : vector<2x128xf32>
    %338 = tpu.matmul %190, %191, %cst_57 {dimension_numbers = #tpu.dot_dimension_numbers<[1], [0], [0], [1], [0, 0, 1, 1], [], []>} : vector<2x32xf32>, vector<32x128xf32>, vector<2x128xf32> -> vector<2x128xf32>
    %339 = arith.addf %338, %195 : vector<2x128xf32>
    %cst_58 = arith.constant dense<0.000000e+00> : vector<2x128xf32>
    %340 = tpu.matmul %337, %192, %cst_58 {dimension_numbers = #tpu.dot_dimension_numbers<[1], [0], [0], [1], [0, 0, 1, 1], [], []>} : vector<2x32xf32>, vector<32x128xf32>, vector<2x128xf32> -> vector<2x128xf32>
    %341 = arith.addf %339, %340 : vector<2x128xf32>
    %342 = vector.extract_strided_slice %341 {offsets = [0, 0], sizes = [2, 96], strides = [1, 1]} : vector<2x128xf32> to vector<2x96xf32>
    %343 = arith.negf %342 : vector<2x96xf32>
    %344 = math.exp %343 : vector<2x96xf32>
    %cst_59 = arith.constant 1.000000e+00 : f32
    %345 = vector.broadcast %cst_59 : f32 to vector<2x96xf32>
    %346 = arith.addf %345, %344 : vector<2x96xf32>
    %347 = arith.divf %345, %346 : vector<2x96xf32>
    %348 = vector.extract_strided_slice %341 {offsets = [0, 96], sizes = [2, 32], strides = [1, 1]} : vector<2x128xf32> to vector<2x32xf32>
    %349 = math.tanh %348 : vector<2x32xf32>
    %350 = vector.extract_strided_slice %347 {offsets = [0, 32], sizes = [2, 32], strides = [1, 1]} : vector<2x96xf32> to vector<2x32xf32>
    %351 = arith.mulf %350, %334 : vector<2x32xf32>
    %352 = vector.extract_strided_slice %347 {offsets = [0, 0], sizes = [2, 32], strides = [1, 1]} : vector<2x96xf32> to vector<2x32xf32>
    %353 = arith.mulf %352, %349 : vector<2x32xf32>
    %354 = arith.addf %351, %353 : vector<2x32xf32>
    %355 = vector.extract_strided_slice %347 {offsets = [0, 64], sizes = [2, 32], strides = [1, 1]} : vector<2x96xf32> to vector<2x32xf32>
    %356 = math.tanh %354 : vector<2x32xf32>
    %357 = arith.mulf %355, %356 : vector<2x32xf32>
    %cst_60 = arith.constant 0.000000e+00 : f32
    %358 = vector.broadcast %cst_60 : f32 to vector<2x32xf32>
    %359 = arith.maximumf %357, %358 : vector<2x32xf32>
    %c160 = arith.constant 160 : index
    %c0_61 = arith.constant 0 : index
    %360 = vector.load %arg1[%c160, %c0_61] : memref<264x128xf32, #tpu.memory_space<vmem>>, vector<32x50xf32>
    %cst_62 = arith.constant dense<0.000000e+00> : vector<2x50xf32>
    %361 = tpu.matmul %359, %360, %cst_62 {dimension_numbers = #tpu.dot_dimension_numbers<[1], [0], [0], [1], [0, 0, 1, 1], [], []>} : vector<2x32xf32>, vector<32x50xf32>, vector<2x50xf32> -> vector<2x50xf32>
    %c192 = arith.constant 192 : index
    %c0_63 = arith.constant 0 : index
    %362 = vector.load %arg1[%c192, %c0_63] : memref<264x128xf32, #tpu.memory_space<vmem>>, vector<1x50xf32>
    %363 = vector.broadcast %362 : vector<1x50xf32> to vector<2x50xf32>
    %364 = arith.addf %361, %363 : vector<2x50xf32>
    %cst_64 = arith.constant 0.000000e+00 : f32
    %365 = vector.broadcast %cst_64 : f32 to vector<2x50xf32>
    %366 = arith.maximumf %364, %365 : vector<2x50xf32>
    %c200 = arith.constant 200 : index
    %c0_65 = arith.constant 0 : index
    %367 = vector.load %arg1[%c200, %c0_65] : memref<264x128xf32, #tpu.memory_space<vmem>>, vector<50x4xf32>
    %cst_66 = arith.constant dense<0.000000e+00> : vector<2x4xf32>
    %368 = tpu.matmul %366, %367, %cst_66 {dimension_numbers = #tpu.dot_dimension_numbers<[1], [0], [0], [1], [0, 0, 1, 1], [], []>} : vector<2x50xf32>, vector<50x4xf32>, vector<2x4xf32> -> vector<2x4xf32>
    %c256 = arith.constant 256 : index
    %c0_67 = arith.constant 0 : index
    %369 = vector.load %arg1[%c256, %c0_67] : memref<264x128xf32, #tpu.memory_space<vmem>>, vector<1x4xf32>
    %370 = vector.broadcast %369 : vector<1x4xf32> to vector<2x4xf32>
    %371 = arith.addf %368, %370 : vector<2x4xf32>
    %c0_68 = arith.constant 0 : index
    %c0_69 = arith.constant 0 : index
    %372 = vector.load %arg2[%c0_68, %c0_69] : memref<2x4xf32, #tpu.memory_space<vmem>>, vector<2x4xf32>
    tpu.vector_store %arg2[%c0_68, %c0_69], %371 {strides = array<i32>} : memref<2x4xf32, #tpu.memory_space<vmem>>, vector<2x4xf32>,
    return
  }
}

</mosaic_0001>

<bundles_post_ra>
// kernel: model_forward.1
= control target key start
LH: loop header
LB: loop body
LE: loop exit
PB: predicated region body
PF: predicated region fallthrough
CT: control target
= control target key end

     0   :  { %7 = vsyncpa [#allocation3], 0  ;;  %s2003_s0 = inlined_call_operand.hbm [shape: f32[16,8], index: 0, kind: input, shape index: {}]   ;;  %s2004_s1 = inlined_call_operand.hbm [shape: f32[264,128], index: 1, kind: input, shape index: {}]   ;;  %s2005_s2 = inlined_call_operand.hbm [shape: f32[2,4], index: 2, kind: output, shape index: {}]  }
   0x1   :  { %8 = vsyncpa [#allocation6], 0 }
   0x2   :  { %9 = vsyncpa [#allocation4], 0  ;;  %s14_s11 = sshll.u32 %s2003_s0, 4  ;;  %s1736_s12 = smov [#allocation2]   ;;  %s15_s11 = int_to_ptr.hbm [resolvable:$true] %s14_s11 }
   0x3   :  { %s16_s13 = sshll.u32 %s1736_s12, 4  ;;  %s27_s16 = sshll.u32 %s2004_s1, 4  ;;  %s17_s13 = int_to_ptr.vmem [resolvable:$true] %s16_s13  ;;  %s28_s16 = int_to_ptr.hbm [resolvable:$true] %s27_s16 }
   0x4   :  { %s1737_s17 = smov 128   ;;  %s1738_s18 = smov 8  }
   0x5   :  { %22 = dma.hbm_to_vmem [thread:$0]  %s15_s11, 256, %s17_s13, [#allocation3], %s1737_s17, %s1737_s17, %s1738_s18  }
   0x6   :  { %s1739_s19 = smov [#allocation5]  }
   0x7   :  { %s29_s20 = sshll.u32 %s1739_s19, 4  ;;  %s30_s20 = int_to_ptr.vmem [resolvable:$true] %s29_s20 }
   0x8   :  { %35 = dma.hbm_to_vmem [thread:$0]  %s28_s16, 4224, %s30_s20, [#allocation6], %s1737_s17, %s1737_s17, %s1738_s18  }
   0x9   :  { %1730 = dma.done.wait [#allocation3], 256  }
   0xa   :  { %1731 = vsyncadd [#allocation3], 4294967040 }
   0xb   :  { %1732 = dma.done.wait [#allocation6], 4224  }
   0xc   :  { %1733 = vsyncadd [#allocation6], 4294963072  ;;  %vm49_vm0 = vcmask 64512   ;;  %v46_v0 = vld [vmem:[#allocation5] sm:$0xff]  ;;  %v44_v1 = vld [vmem:[#allocation2] sm:$0xff]  ;;  %vm92_vm1 = vcmask 1046528  }
   0xd   :  { %71 = vmatpush.msra.mxu0 %v46_v0  ;;  %v45_v2 = vld [vmem:[#allocation2 + $0x8] sm:$0xff]  ;;  %v81_v4 = vld [vmem:[#allocation5 + $0x10] sm:$0xff]  ;;  %v1524_v5 = vld [vmem:[#allocation5 + $0x8] ss:$0 sm:$0xff]  ;;  %vm85_vm2 = vcmask 121856   ;;  %vm135_vm3 = vcmask 1041408  }
   0xe   :  { %1467 = vmatmul.msk.f32.vlgmr.msra.gmra.mxu0 %vm49_vm0, %v44_v1  ;;  %v82_v3 = vld [vmem:[#allocation5 + $0x18] sm:$0x7f]  ;;  %v121_v12 = vld [vmem:[#allocation5 + $0x28] sm:$0x3]  ;;  %v124_v14 = vld [vmem:[#allocation5 + $0x40] sm:$0xff]  ;;  %v1740_v17 = vmov 0.0  }
   0xf   :  { %1469 = vmatpush.msk.msra.mxu1 %vm92_vm1, %v82_v3  ;;  %1472 = vmatpush.msk.msra.mxu2 %vm135_vm3, %v121_v12  ;;  %v125_v13 = vld [vmem:[#allocation5 + $0x48] sm:$0xff]  ;;  %v123_v15 = vld [vmem:[#allocation5 + $0x38] sm:$0xff]  ;;  %v122_v16 = vld [vmem:[#allocation5 + $0x30] sm:$0xff]  ;;  %vm128_vm4 = vcmask 15360   ;;  %vm165_vm5 = vcmask 1040384   ;;  %s1741_s0 = smov 32  }
  0x10   :  { %217 = vmatpush.msrb.mxu0 %v125_v13  ;;  %280 = vmatpush.msra.mxu3 %v125_v13  ;;  %v1525_v18 = vld [vmem:[#allocation5 + $0x20] ss:$0 sm:$0xff]  ;;  %v1526_v26 = vld [vmem:[#allocation5 + $0x50] ss:$0 sm:$0xff]  ;;  %s1742_s1 = smov 64   ;;  %vm201_vm10 = vcmask 261120  }
  0x11   :  { %111 = vmatpush.msra.mxu1 %v81_v4  ;;  %406 = vmatpush.msrb.mxu2 %v125_v13  ;;  %s1743_s21 = smov [#allocation7]   ;;  %s1456_s25 = sshll.u32 %s2005_s2, 4  ;;  %s1457_s25 = int_to_ptr.hbm [resolvable:$true] %s1456_s25 }
  0x12   :  { %218 = vmatpush.msrb.mxu0 %v124_v14  ;;  %281 = vmatpush.msra.mxu3 %v124_v14  ;;  %s1454_s22 = sshll.u32 %s1743_s21, 4  ;;  %s1455_s22 = int_to_ptr.vmem [resolvable:$true] %s1454_s22 }
  0x13   :  { %469 = vmatpush.msrb.mxu1 %v125_v13  ;;  %407 = vmatpush.msrb.mxu2 %v124_v14 }
  0x14   :  { %219 = vmatpush.msrb.mxu0 %v123_v15  ;;  %282 = vmatpush.msra.mxu3 %v123_v15 }
  0x15   :  { %470 = vmatpush.msrb.mxu1 %v124_v14  ;;  %408 = vmatpush.msrb.mxu2 %v123_v15 }
  0x16   :  { %1468 = vmatmul.msk.f32.gmra.mxu0 %vm49_vm0, %v45_v2  ;;  %283 = vmatpush.msra.mxu3 %v122_v16 }
  0x17   :  { %471 = vmatpush.msrb.mxu1 %v123_v15  ;;  %220 = vmatpush.msrb.mxu0 %v122_v16 }
  0x18   :  { %409 = vmatpush.msrb.mxu2 %v122_v16  ;;  %532 = vmatpush.msrb.mxu3 %v125_v13 }
  0x19   :  { %343 = vmatpush.msra.mxu0 %v125_v13  ;;  %472 = vmatpush.msrb.mxu1 %v122_v16 }
  0x1a   :  { %533 = vmatpush.msrb.mxu3 %v124_v14 }
  0x1b   :  { %344 = vmatpush.msra.mxu0 %v124_v14 }
  0x1c   :  { %534 = vmatpush.msrb.mxu3 %v123_v15 }
  0x1d   :  { %345 = vmatpush.msra.mxu0 %v123_v15 }
  0x1e   :  { %221 = vmatmul.f32.vlgmr.msrb.gmra.mxu0 %v1740_v17  ;;  %535 = vmatpush.msrb.mxu3 %v122_v16 }
  0x1f   :  { %346 = vmatpush.msra.mxu0 %v122_v16 }
  0x21   :  { %595 = vmatpush.msrb.mxu0 %v125_v13 }
  0x23   :  { %596 = vmatpush.msrb.mxu0 %v124_v14 }
  0x25   :  { %597 = vmatpush.msrb.mxu0 %v123_v15 }
  0x27   :  { %598 = vmatpush.msrb.mxu0 %v122_v16 }
  0x8b   :  { %v73_v6 = vpop.f32.mrf.mxu0 }
  0x8c   :  { %v74_v7 = vadd.f32 %v1524_v5, %v73_v6 }
  0x8e   :  { %v79_v8 = vmax.f32 %v74_v7, 0.0 }
  0x90   :  { %1470 = vmatmul.msk.f32.vlgmr.msra.gmra.mxu1 %vm85_vm2, %v79_v8 }
  0x93   :  { %v76_v9 = vpop.f32.mrf.mxu0 }
  0x94   :  { %v77_v10 = vadd.f32 %v1524_v5, %v76_v9 }
  0x96   :  { %v80_v11 = vmax.f32 %v77_v10, 0.0 }
  0x98   :  { %1471 = vmatmul.msk.f32.gmra.mxu1 %vm85_vm2, %v80_v11 }
  0x9b   :  { %v222_v37 = vpop.f32.mrf.mxu0 }
 0x10d   :  { %v113_v19 = vpop.f32.mrf.mxu1 }
 0x10e   :  { %v114_v20 = vadd.f32 %v1525_v18, %v113_v19 }
 0x110   :  { %v119_v21 = vmax.f32 %v114_v20, 0.0 }
 0x112   :  { %1473 = vmatmul.msk.f32.vlgmr.msra.gmra.mxu2 %vm128_vm4, %v119_v21 }
 0x113   :  { %658 = vmatpush.msra.mxu2 %v125_v13 }
 0x115   :  { %v116_v22 = vpop.f32.mrf.mxu1  ;;  %659 = vmatpush.msra.mxu2 %v124_v14 }
 0x116   :  { %v117_v23 = vadd.f32 %v1525_v18, %v116_v22 }
 0x117   :  { %660 = vmatpush.msra.mxu2 %v123_v15 }
 0x118   :  { %v120_v24 = vmax.f32 %v117_v23, 0.0 }
 0x119   :  { %661 = vmatpush.msra.mxu2 %v122_v16 }
 0x11a   :  { %1474 = vmatmul.msk.f32.gmra.mxu2 %vm128_vm4, %v120_v24 }
 0x195   :  { %v156_v25 = vpop.f32.mrf.mxu2 }
 0x196   :  { %v157_v27 = vadd.f32 %v1526_v26, %v156_v25 }
 0x198   :  { %v168_v30 = vrot.slane %v157_v27, 1  ;;  %v171_v31 = vrot.slane %v157_v27, 2  ;;  %v176_v32 = vrot.slane %v157_v27, 3  ;;  %v181_v33 = vrot.slane %v157_v27, 4 }
 0x199   :  { %v186_v34 = vrot.slane %v157_v27, 5  ;;  %v191_v35 = vrot.slane %v157_v27, 6  ;;  %v196_v48 = vrot.slane %v157_v27, 7 }
 0x19d   :  { %v159_v28 = vpop.f32.mrf.mxu2 }
 0x19e   :  { %v160_v29 = vadd.f32 %v1526_v26, %v159_v28 }
 0x1a0   :  { %v163_v36 = vrot.slane %v160_v29, 7  ;;  %v170_v38 = vsel %vm165_vm5, %v168_v30, %v160_v29  ;;  %v173_v39 = vrot.slane %v160_v29, 1  ;;  %v178_v40 = vrot.slane %v160_v29, 2 }
 0x1a1   :  { %v183_v41 = vrot.slane %v160_v29, 3  ;;  %v188_v42 = vrot.slane %v160_v29, 4  ;;  %v193_v43 = vrot.slane %v160_v29, 5  ;;  %v198_v44 = vrot.slane %v160_v29, 6 }
 0x1a2   :  { %v166_v45 = vsel %vm165_vm5, %v157_v27, %v163_v36  ;;  %v1770_v46 = vsel %vm165_vm5, %v171_v31, %v173_v39  ;;  %v1773_v47 = vsel %vm165_vm5, %v176_v32, %v178_v40 }
 0x1a3   :  { %v225_v49 = vadd.f32 %v222_v37, %v166_v45  ;;  %v1776_v50 = vsel %vm165_vm5, %v181_v33, %v183_v41  ;;  %v1779_v51 = vsel %vm165_vm5, %v186_v34, %v188_v42  ;;  %v1782_v52 = vsel %vm165_vm5, %v191_v35, %v193_v43 }
 0x1a4   :  { %v1785_v53 = vsel %vm165_vm5, %v196_v48, %v198_v44 }
 0x1a5   :  { %1530 = vtanh.f32 %v225_v49  ;;  %v1475_v55 = vmul.f32 -1.442695, %v225_v49 }
 0x1a7   :  { %1532 = vpow2.f32 %v1475_v55 }
 0x1ab   :  { %v1531_v54 = vpop.eup %1530 }
 0x1ac   :  { %248 = vrot.lane.b32.xlu0 %v1531_v54, %s1741_s0 }
 0x1ad   :  { %v1533_v56 = vpop.eup %1532 }
 0x1ae   :  { %v229_v57 = vadd.f32 1.0, %v1533_v56 }
 0x1b0   :  { %1534 = vrcp.f32 %v229_v57  ;;  %v241_v63 = vand.u32 2147483648, %v229_v57  ;;  %vm235_vm7 = vweird.f32 %v229_v57  ;;  %v239_v0 = vand.u32 2147483647, %v229_v57 }
 0x1b2   :  { %v242_v2 = vor.u32 1.1754944e-38, %v241_v63  ;;  %vm240_vm9 = vcmp.eq.f32.partialorder %v239_v0, 8.507059e+37 }
 0x1b6   :  { %v1535_v58 = vpop.eup %1534 }
 0x1b7   :  { %v231_v59 = vmul.f32 %v1535_v58, %v229_v57  ;;  %vm236_vm6 = vweird.f32 %v1535_v58 }
 0x1b8   :  { %vm237_vm8 = vmor %vm235_vm7, %vm236_vm6 }
 0x1b9   :  { %v232_v60 = vsub.f32 1.0, %v231_v59 }
 0x1bb   :  { %v233_v61 = vmul.f32 %v1535_v58, %v232_v60 }
 0x1bd   :  { %v234_v62 = vadd.f32 %v1535_v58, %v233_v61 }
 0x1bf   :  { %v238_v1 = vsel %vm237_vm8, %v1535_v58, %v234_v62 }
 0x1c0   :  { %v243_v4 = vsel %vm240_vm9, %v242_v2, %v238_v1 }
 0x1c1   :  { %v246_v6 = vmul.f32 0.0, %v243_v4 }
 0x21e   :  { %v249_v3 = vpop.permute.xlu0 %248 }
 0x21f   :  { %v251_v5 = vmul.f32 %v249_v3, %v243_v4 }
 0x221   :  { %253 = vrot.lane.b32.xlu0 %v251_v5, %s1741_s0 }
 0x293   :  { %v254_v7 = vpop.permute.xlu0 %253 }
 0x294   :  { %v256_v8 = vadd.f32 %v254_v7, %v246_v6 }
 0x296   :  { %1536 = vtanh.f32 %v256_v8 }
 0x29c   :  { %v1537_v9 = vpop.eup %1536 }
 0x29d   :  { %259 = vrot.lane.b32.xlu1 %v1537_v9, %s1741_s0 }
 0x30f   :  { %v260_v10 = vpop.permute.xlu1 %259 }
 0x310   :  { %v262_v11 = vmul.f32 %v260_v10, %v243_v4 }
 0x312   :  { %264 = vrot.lane.b32.xlu1 %v262_v11, %s1742_s1 }
 0x384   :  { %v1791_v12 = vpop.permute.xlu1 %264 }
 0x385   :  { %1476 = vmatmul.msk.f32.vlgmr.msra.gmra.mxu3 %vm201_vm10, %v1791_v12 }
 0x408   :  { %v285_v13 = vpop.f32.mrf.mxu3 }
 0x409   :  { %v288_v14 = vadd.f32 %v285_v13, %v170_v38 }
 0x40b   :  { %1538 = vtanh.f32 %v288_v14  ;;  %v1477_v16 = vmul.f32 -1.442695, %v288_v14 }
 0x40d   :  { %1540 = vpow2.f32 %v1477_v16 }
 0x411   :  { %v1539_v15 = vpop.eup %1538 }
 0x412   :  { %311 = vrot.lane.b32.xlu2 %v1539_v15, %s1741_s0 }
 0x413   :  { %v1541_v18 = vpop.eup %1540 }
 0x414   :  { %v292_v19 = vadd.f32 1.0, %v1541_v18 }
 0x416   :  { %1542 = vrcp.f32 %v292_v19  ;;  %v304_v25 = vand.u32 2147483648, %v292_v19  ;;  %vm298_vm12 = vweird.f32 %v292_v19  ;;  %v302_v26 = vand.u32 2147483647, %v292_v19 }
 0x418   :  { %v305_v28 = vor.u32 1.1754944e-38, %v304_v25  ;;  %vm303_vm14 = vcmp.eq.f32.partialorder %v302_v26, 8.507059e+37 }
 0x41c   :  { %v1543_v20 = vpop.eup %1542 }
 0x41d   :  { %v294_v21 = vmul.f32 %v1543_v20, %v292_v19  ;;  %vm299_vm11 = vweird.f32 %v1543_v20 }
 0x41e   :  { %vm300_vm13 = vmor %vm298_vm12, %vm299_vm11 }
 0x41f   :  { %v295_v22 = vsub.f32 1.0, %v294_v21 }
 0x421   :  { %v296_v23 = vmul.f32 %v1543_v20, %v295_v22 }
 0x423   :  { %v297_v24 = vadd.f32 %v1543_v20, %v296_v23 }
 0x425   :  { %v301_v27 = vsel %vm300_vm13, %v1543_v20, %v297_v24 }
 0x426   :  { %v306_v30 = vsel %vm303_vm14, %v305_v28, %v301_v27 }
 0x427   :  { %v309_v32 = vmul.f32 %v306_v30, %v256_v8 }
 0x46c   :  { %v312_v29 = vpop.permute.xlu2 %311 }
 0x46d   :  { %v314_v31 = vmul.f32 %v312_v29, %v306_v30 }
 0x46f   :  { %316 = vrot.lane.b32.xlu2 %v314_v31, %s1741_s0  ;;  %v1816_v31 = vld [vmem:[#allocation5 + $0x68] sm:$0xff] }
 0x4c9   :  { %v317_v33 = vpop.permute.xlu2 %316 }
 0x4ca   :  { %v319_v34 = vadd.f32 %v317_v33, %v309_v32  ;;  %v1820_v32 = vld [vmem:[#allocation5 + $0x60] sm:$0xff]  ;;  %v1824_v33 = vld [vmem:[#allocation5 + $0x58] sm:$0xff] }
 0x4cc   :  { %1544 = vtanh.f32 %v319_v34 }
 0x4d2   :  { %v1545_v35 = vpop.eup %1544 }
 0x4d3   :  { %322 = vrot.lane.b32.xlu0 %v1545_v35, %s1741_s0 }
 0x545   :  { %v323_v36 = vpop.permute.xlu0 %322 }
 0x546   :  { %v325_v37 = vmul.f32 %v323_v36, %v306_v30  ;;  %v1814_v30 = vld [vmem:[#allocation5 + $0x70] sm:$0xff] }
 0x547   :  { %726 = vmatpush.msra.mxu1 %v1814_v30 }
 0x548   :  { %327 = vrot.lane.b32.xlu1 %v325_v37, %s1742_s1 }
 0x549   :  { %727 = vmatpush.msra.mxu1 %v1816_v31 }
 0x54b   :  { %728 = vmatpush.msra.mxu1 %v1820_v32 }
 0x54d   :  { %729 = vmatpush.msra.mxu1 %v1824_v33 }
 0x5ba   :  { %v1799_v38 = vpop.permute.xlu1 %327 }
 0x5bb   :  { %1478 = vmatmul.msk.f32.vlgmr.msra.gmra.mxu0 %vm201_vm10, %v1799_v38 }
 0x5bc   :  { %804 = vmatpush.msra.mxu0 %v1814_v30 }
 0x5be   :  { %805 = vmatpush.msra.mxu0 %v1816_v31 }
 0x5c0   :  { %806 = vmatpush.msra.mxu0 %v1820_v32 }
 0x5c2   :  { %807 = vmatpush.msra.mxu0 %v1824_v33 }
 0x638   :  { %v348_v39 = vpop.f32.mrf.mxu0 }
 0x639   :  { %v351_v40 = vadd.f32 %v348_v39, %v1770_v46 }
 0x63b   :  { %1546 = vtanh.f32 %v351_v40  ;;  %v1479_v42 = vmul.f32 -1.442695, %v351_v40 }
 0x63d   :  { %1548 = vpow2.f32 %v1479_v42 }
 0x641   :  { %v1547_v41 = vpop.eup %1546 }
 0x642   :  { %374 = vrot.lane.b32.xlu2 %v1547_v41, %s1741_s0 }
 0x643   :  { %v1549_v43 = vpop.eup %1548 }
 0x644   :  { %v355_v44 = vadd.f32 1.0, %v1549_v43 }
 0x646   :  { %1550 = vrcp.f32 %v355_v44  ;;  %v367_v56 = vand.u32 2147483648, %v355_v44  ;;  %vm361_vm0 = vweird.f32 %v355_v44  ;;  %v365_v57 = vand.u32 2147483647, %v355_v44 }
 0x648   :  { %v368_v58 = vor.u32 1.1754944e-38, %v367_v56  ;;  %vm366_vm2 = vcmp.eq.f32.partialorder %v365_v57, 8.507059e+37 }
 0x64c   :  { %v1551_v45 = vpop.eup %1550 }
 0x64d   :  { %v357_v48 = vmul.f32 %v1551_v45, %v355_v44  ;;  %vm362_vm15 = vweird.f32 %v1551_v45 }
 0x64e   :  { %vm363_vm1 = vmor %vm361_vm0, %vm362_vm15 }
 0x64f   :  { %v358_v49 = vsub.f32 1.0, %v357_v48 }
 0x651   :  { %v359_v54 = vmul.f32 %v1551_v45, %v358_v49 }
 0x653   :  { %v360_v55 = vadd.f32 %v1551_v45, %v359_v54 }
 0x655   :  { %v364_v46 = vsel %vm363_vm1, %v1551_v45, %v360_v55 }
 0x656   :  { %v369_v60 = vsel %vm366_vm2, %v368_v58, %v364_v46 }
 0x657   :  { %v372_v62 = vmul.f32 %v369_v60, %v319_v34 }
 0x69c   :  { %v375_v59 = vpop.permute.xlu2 %374 }
 0x69d   :  { %v377_v61 = vmul.f32 %v375_v59, %v369_v60 }
 0x69f   :  { %379 = vrot.lane.b32.xlu0 %v377_v61, %s1741_s0 }
 0x711   :  { %v380_v63 = vpop.permute.xlu0 %379 }
 0x712   :  { %v382_v0 = vadd.f32 %v380_v63, %v372_v62  ;;  %v1854_v63 = vld [vmem:[#allocation5 + $0x90] sm:$0xff] }
 0x713   :  { %746 = vmatpush.msra.mxu3 %v1854_v63 }
 0x714   :  { %1552 = vtanh.f32 %v382_v0 }
 0x71a   :  { %v1553_v1 = vpop.eup %1552 }
 0x71b   :  { %385 = vrot.lane.b32.xlu1 %v1553_v1, %s1741_s0  ;;  %v1860_v1 = vld [vmem:[#allocation5 + $0x80] sm:$0xff] }
 0x78d   :  { %v386_v2 = vpop.permute.xlu1 %385 }
 0x78e   :  { %v388_v3 = vmul.f32 %v386_v2, %v369_v60  ;;  %v1864_v2 = vld [vmem:[#allocation5 + $0x78] sm:$0xff] }
 0x790   :  { %390 = vrot.lane.b32.xlu2 %v388_v3, %s1742_s1 }
 0x7ea   :  { %v391_v4 = vpop.permute.xlu2 %390 }
 0x7eb   :  { %1480 = vmatmul.msk.f32.vlgmr.msrb.gmra.mxu2 %vm201_vm10, %v391_v4 }
 0x7ec   :  { %829 = vmatpush.msrb.mxu2 %v1854_v63 }
 0x86e   :  { %v411_v5 = vpop.f32.mrf.mxu2 }
 0x86f   :  { %v414_v6 = vadd.f32 %v411_v5, %v1773_v47 }
 0x871   :  { %1554 = vtanh.f32 %v414_v6  ;;  %v1481_v8 = vmul.f32 -1.442695, %v414_v6 }
 0x873   :  { %1556 = vpow2.f32 %v1481_v8 }
 0x877   :  { %v1555_v7 = vpop.eup %1554 }
 0x878   :  { %437 = vrot.lane.b32.xlu0 %v1555_v7, %s1741_s0 }
 0x879   :  { %v1557_v9 = vpop.eup %1556 }
 0x87a   :  { %v418_v10 = vadd.f32 1.0, %v1557_v9 }
 0x87c   :  { %1558 = vrcp.f32 %v418_v10  ;;  %v430_v18 = vand.u32 2147483648, %v418_v10  ;;  %vm424_vm5 = vweird.f32 %v418_v10  ;;  %v428_v19 = vand.u32 2147483647, %v418_v10 }
 0x87e   :  { %v431_v20 = vor.u32 1.1754944e-38, %v430_v18  ;;  %vm429_vm7 = vcmp.eq.f32.partialorder %v428_v19, 8.507059e+37 }
 0x882   :  { %v1559_v11 = vpop.eup %1558 }
 0x883   :  { %v420_v13 = vmul.f32 %v1559_v11, %v418_v10  ;;  %vm425_vm4 = vweird.f32 %v1559_v11 }
 0x884   :  { %vm426_vm6 = vmor %vm424_vm5, %vm425_vm4 }
 0x885   :  { %v421_v14 = vsub.f32 1.0, %v420_v13 }
 0x887   :  { %v422_v15 = vmul.f32 %v1559_v11, %v421_v14 }
 0x889   :  { %v423_v16 = vadd.f32 %v1559_v11, %v422_v15 }
 0x88b   :  { %v427_v47 = vsel %vm426_vm6, %v1559_v11, %v423_v16 }
 0x88c   :  { %v432_v22 = vsel %vm429_vm7, %v431_v20, %v427_v47 }
 0x88d   :  { %v435_v24 = vmul.f32 %v432_v22, %v382_v0  ;;  %v1856_v0 = vld [vmem:[#allocation5 + $0x88] sm:$0xff] }
 0x88e   :  { %747 = vmatpush.msra.mxu3 %v1856_v0  ;;  %830 = vmatpush.msrb.mxu2 %v1856_v0 }
 0x890   :  { %748 = vmatpush.msra.mxu3 %v1860_v1  ;;  %831 = vmatpush.msrb.mxu2 %v1860_v1 }
 0x892   :  { %749 = vmatpush.msra.mxu3 %v1864_v2  ;;  %832 = vmatpush.msrb.mxu2 %v1864_v2 }
 0x8ea   :  { %v438_v21 = vpop.permute.xlu0 %437 }
 0x8eb   :  { %v440_v23 = vmul.f32 %v438_v21, %v432_v22 }
 0x8ed   :  { %442 = vrot.lane.b32.xlu1 %v440_v23, %s1741_s0  ;;  %v1884_v23 = vld [vmem:[#allocation5 + $0x98] ss:$0 sm:$0xff] }
 0x95f   :  { %v443_v25 = vpop.permute.xlu1 %442 }
 0x960   :  { %v445_v26 = vadd.f32 %v443_v25, %v435_v24 }
 0x962   :  { %1560 = vtanh.f32 %v445_v26 }
 0x968   :  { %v1561_v27 = vpop.eup %1560 }
 0x969   :  { %448 = vrot.lane.b32.xlu2 %v1561_v27, %s1741_s0 }
 0x9c3   :  { %v449_v28 = vpop.permute.xlu2 %448 }
 0x9c4   :  { %v451_v29 = vmul.f32 %v449_v28, %v432_v22 }
 0x9c6   :  { %453 = vrot.lane.b32.xlu0 %v451_v29, %s1742_s1 }
 0xa38   :  { %v1830_v34 = vpop.permute.xlu0 %453 }
 0xa39   :  { %1482 = vmatmul.msk.f32.vlgmr.msrb.gmra.mxu1 %vm201_vm10, %v1830_v34 }
 0xa3a   :  { %887 = vmatpush.msrb.mxu1 %v1814_v30 }
 0xa3c   :  { %888 = vmatpush.msrb.mxu1 %v1816_v31 }
 0xa3e   :  { %889 = vmatpush.msrb.mxu1 %v1820_v32 }
 0xa40   :  { %890 = vmatpush.msrb.mxu1 %v1824_v33 }
 0xa41   :  { %1490 = vmatmul.msk.f32.vlgmr.msra.gmra.mxu1 %vm201_vm10, %v1791_v12 }
 0xa42   :  { %1053 = vmatpush.msra.mxu1 %v1814_v30 }
 0xa44   :  { %1054 = vmatpush.msra.mxu1 %v1816_v31 }
 0xa46   :  { %1055 = vmatpush.msra.mxu1 %v1820_v32 }
 0xa48   :  { %1056 = vmatpush.msra.mxu1 %v1824_v33 }
 0xa49   :  { %1495 = vmatmul.msk.f32.vlgmr.msrb.gmra.mxu1 %vm201_vm10, %v391_v4 }
 0xa4a   :  { %1219 = vmatpush.msrb.mxu1 %v1814_v30 }
 0xa4c   :  { %1220 = vmatpush.msrb.mxu1 %v1816_v31 }
 0xa4e   :  { %1221 = vmatpush.msrb.mxu1 %v1820_v32 }
 0xa50   :  { %1222 = vmatpush.msrb.mxu1 %v1824_v33 }
 0xab6   :  { %v474_v35 = vpop.f32.mrf.mxu1 }
 0xab7   :  { %v477_v12 = vadd.f32 %v474_v35, %v1776_v50 }
 0xab9   :  { %1562 = vtanh.f32 %v477_v12  ;;  %v1483_v37 = vmul.f32 -1.442695, %v477_v12 }
 0xabb   :  { %1564 = vpow2.f32 %v1483_v37 }
 0xabe   :  { %v731_v25 = vpop.f32.mrf.mxu1 }
 0xabf   :  { %v1563_v36 = vpop.eup %1562  ;;  %v732_v27 = vadd.f32 %v1884_v23, %v731_v25 }
 0xac0   :  { %500 = vrot.lane.b32.xlu1 %v1563_v36, %s1741_s0 }
 0xac1   :  { %v1565_v39 = vpop.eup %1564 }
 0xac2   :  { %v481_v40 = vadd.f32 1.0, %v1565_v39 }
 0xac4   :  { %1566 = vrcp.f32 %v481_v40  ;;  %v493_v48 = vand.u32 2147483648, %v481_v40  ;;  %vm487_vm9 = vweird.f32 %v481_v40  ;;  %v491_v49 = vand.u32 2147483647, %v481_v40 }
 0xac6   :  { %v494_v54 = vor.u32 1.1754944e-38, %v493_v48  ;;  %vm492_vm12 = vcmp.eq.f32.partialorder %v491_v49, 8.507059e+37 }
 0xaca   :  { %v1567_v41 = vpop.eup %1566 }
 0xacb   :  { %v483_v42 = vmul.f32 %v1567_v41, %v481_v40  ;;  %vm488_vm8 = vweird.f32 %v1567_v41 }
 0xacc   :  { %vm489_vm11 = vmor %vm487_vm9, %vm488_vm8 }
 0xacd   :  { %v484_v43 = vsub.f32 1.0, %v483_v42 }
 0xacf   :  { %v485_v44 = vmul.f32 %v1567_v41, %v484_v43 }
 0xad1   :  { %v486_v45 = vadd.f32 %v1567_v41, %v485_v44 }
 0xad3   :  { %v490_v50 = vsel %vm489_vm11, %v1567_v41, %v486_v45 }
 0xad4   :  { %v495_v56 = vsel %vm492_vm12, %v494_v54, %v490_v50 }
 0xad5   :  { %v498_v46 = vmul.f32 %v495_v56, %v445_v26 }
 0xb32   :  { %v501_v55 = vpop.permute.xlu1 %500 }
 0xb33   :  { %v503_v57 = vmul.f32 %v501_v55, %v495_v56 }
 0xb35   :  { %505 = vrot.lane.b32.xlu2 %v503_v57, %s1741_s0 }
 0xb8f   :  { %v506_v58 = vpop.permute.xlu2 %505 }
 0xb90   :  { %v508_v59 = vadd.f32 %v506_v58, %v498_v46 }
 0xb92   :  { %1568 = vtanh.f32 %v508_v59 }
 0xb98   :  { %v1569_v60 = vpop.eup %1568 }
 0xb99   :  { %511 = vrot.lane.b32.xlu0 %v1569_v60, %s1741_s0 }
 0xc0b   :  { %v512_v61 = vpop.permute.xlu0 %511 }
 0xc0c   :  { %v514_v62 = vmul.f32 %v512_v61, %v495_v56 }
 0xc0e   :  { %516 = vrot.lane.b32.xlu1 %v514_v62, %s1742_s1 }
 0xc80   :  { %v517_v3 = vpop.permute.xlu1 %516 }
 0xc81   :  { %1484 = vmatmul.msk.f32.vlgmr.msrb.gmra.mxu3 %vm201_vm10, %v517_v3  ;;  %1501 = vmatmul.msk.f32.vlgmr.msra.gmra.mxu1 %vm201_vm10, %v517_v3 }
 0xc82   :  { %912 = vmatpush.msrb.mxu3 %v1854_v63 }
 0xc84   :  { %913 = vmatpush.msrb.mxu3 %v1856_v0 }
 0xc86   :  { %914 = vmatpush.msrb.mxu3 %v1860_v1 }
 0xc88   :  { %915 = vmatpush.msrb.mxu3 %v1864_v2 }
 0xc89   :  { %750 = vmatmul.f32.vlgmr.msra.gmra.mxu3 %v1740_v17 }
 0xc8a   :  { %1078 = vmatpush.msra.mxu3 %v1854_v63 }
 0xc8c   :  { %1079 = vmatpush.msra.mxu3 %v1856_v0 }
 0xc8e   :  { %1080 = vmatpush.msra.mxu3 %v1860_v1 }
 0xc90   :  { %1081 = vmatpush.msra.mxu3 %v1864_v2 }
 0xd04   :  { %v537_v4 = vpop.f32.mrf.mxu3 }
 0xd05   :  { %v540_v5 = vadd.f32 %v537_v4, %v1779_v51 }
 0xd07   :  { %1570 = vtanh.f32 %v540_v5  ;;  %v1485_v7 = vmul.f32 -1.442695, %v540_v5 }
 0xd09   :  { %1572 = vpow2.f32 %v1485_v7 }
 0xd0c   :  { %v751_v26 = vpop.f32.mrf.mxu3 }
 0xd0d   :  { %v1571_v6 = vpop.eup %1570  ;;  %v754_v28 = vadd.f32 %v751_v26, %v732_v27 }
 0xd0e   :  { %563 = vrot.lane.b32.xlu2 %v1571_v6, %s1741_s0 }
 0xd0f   :  { %v1573_v8 = vpop.eup %1572 }
 0xd10   :  { %v544_v9 = vadd.f32 1.0, %v1573_v8 }
 0xd12   :  { %1574 = vrcp.f32 %v544_v9  ;;  %v556_v15 = vand.u32 2147483648, %v544_v9  ;;  %vm550_vm14 = vweird.f32 %v544_v9  ;;  %v554_v16 = vand.u32 2147483647, %v544_v9 }
 0xd14   :  { %v557_v18 = vor.u32 1.1754944e-38, %v556_v15  ;;  %vm555_vm0 = vcmp.eq.f32.partialorder %v554_v16, 8.507059e+37 }
 0xd18   :  { %v1575_v17 = vpop.eup %1574 }
 0xd19   :  { %v546_v10 = vmul.f32 %v1575_v17, %v544_v9  ;;  %vm551_vm13 = vweird.f32 %v1575_v17 }
 0xd1a   :  { %vm552_vm15 = vmor %vm550_vm14, %vm551_vm13 }
 0xd1b   :  { %v547_v11 = vsub.f32 1.0, %v546_v10 }
 0xd1d   :  { %v548_v13 = vmul.f32 %v1575_v17, %v547_v11 }
 0xd1f   :  { %v549_v14 = vadd.f32 %v1575_v17, %v548_v13 }
 0xd21   :  { %v553_v51 = vsel %vm552_vm15, %v1575_v17, %v549_v14 }
 0xd22   :  { %v558_v47 = vsel %vm555_vm0, %v557_v18, %v553_v51 }
 0xd23   :  { %v561_v21 = vmul.f32 %v558_v47, %v508_v59 }
 0xd68   :  { %v564_v19 = vpop.permute.xlu2 %563 }
 0xd69   :  { %v566_v20 = vmul.f32 %v564_v19, %v558_v47 }
 0xd6b   :  { %568 = vrot.lane.b32.xlu0 %v566_v20, %s1741_s0 }
 0xddd   :  { %v569_v22 = vpop.permute.xlu0 %568 }
 0xdde   :  { %v1886_v24 = vadd.f32 %v569_v22, %v561_v21 }
 0xde0   :  { %1576 = vtanh.f32 %v1886_v24 }
 0xde1   :  { %1578 = vtanh.f32 %v754_v28 }
 0xde6   :  { %v1577_v29 = vpop.eup %1576 }
 0xde7   :  { %574 = vrot.lane.b32.xlu1 %v1577_v29, %s1741_s0  ;;  %v1579_v35 = vpop.eup %1578 }
 0xdef   :  { %777 = vrot.lane.b32.xlu1 %v1579_v35, %s1741_s0 }
 0xe59   :  { %v575_v12 = vpop.permute.xlu1 %574 }
 0xe5a   :  { %v577_v36 = vmul.f32 %v575_v12, %v558_v47 }
 0xe5c   :  { %579 = vrot.lane.b32.xlu2 %v577_v36, %s1742_s1 }
 0xe61   :  { %v778_v50 = vpop.permute.xlu1 %777 }
 0xeb6   :  { %v580_v37 = vpop.permute.xlu2 %579 }
 0xeb7   :  { %1486 = vmatmul.msk.f32.vlgmr.msrb.gmra.mxu0 %vm201_vm10, %v580_v37 }
 0xeb8   :  { %970 = vmatpush.msrb.mxu0 %v1814_v30 }
 0xeba   :  { %971 = vmatpush.msrb.mxu0 %v1816_v31 }
 0xebc   :  { %972 = vmatpush.msrb.mxu0 %v1820_v32 }
 0xebe   :  { %973 = vmatpush.msrb.mxu0 %v1824_v33 }
 0xebf   :  { %1492 = vmatmul.msk.f32.vlgmr.msra.gmra.mxu0 %vm201_vm10, %v1799_v38  ;;  %v1491_v38 = vmul.f32 -1.442695, %v754_v28 }
 0xec0   :  { %1136 = vmatpush.msra.mxu0 %v1814_v30 }
 0xec1   :  { %1580 = vpow2.f32 %v1491_v38 }
 0xec2   :  { %1137 = vmatpush.msra.mxu0 %v1816_v31 }
 0xec4   :  { %1138 = vmatpush.msra.mxu0 %v1820_v32 }
 0xec6   :  { %1139 = vmatpush.msra.mxu0 %v1824_v33 }
 0xec7   :  { %1498 = vmatmul.msk.f32.vlgmr.msrb.gmra.mxu0 %vm201_vm10, %v1830_v34  ;;  %v1581_v39 = vpop.eup %1580 }
 0xec8   :  { %1307 = vmatpush.msrb.mxu0 %v1814_v30  ;;  %v758_v40 = vadd.f32 1.0, %v1581_v39 }
 0xeca   :  { %1308 = vmatpush.msrb.mxu0 %v1816_v31  ;;  %1582 = vrcp.f32 %v758_v40  ;;  %v770_v45 = vand.u32 2147483648, %v758_v40  ;;  %vm764_vm2 = vweird.f32 %v758_v40 }
 0xecc   :  { %1309 = vmatpush.msrb.mxu0 %v1820_v32  ;;  %v771_v49 = vor.u32 1.1754944e-38, %v770_v45 }
 0xece   :  { %1310 = vmatpush.msrb.mxu0 %v1824_v33  ;;  %v768_v33 = vand.u32 2147483647, %v758_v40 }
 0xecf   :  { %1504 = vmatmul.msk.f32.vlgmr.msra.gmra.mxu0 %vm201_vm10, %v580_v37 }
 0xed0   :  { %v1583_v41 = vpop.eup %1582  ;;  %vm769_vm5 = vcmp.eq.f32.partialorder %v768_v33, 8.507059e+37 }
 0xed1   :  { %v760_v42 = vmul.f32 %v1583_v41, %v758_v40  ;;  %vm765_vm1 = vweird.f32 %v1583_v41 }
 0xed2   :  { %vm766_vm4 = vmor %vm764_vm2, %vm765_vm1 }
 0xed3   :  { %v761_v43 = vsub.f32 1.0, %v760_v42 }
 0xed5   :  { %v762_v30 = vmul.f32 %v1583_v41, %v761_v43 }
 0xed7   :  { %v763_v31 = vadd.f32 %v1583_v41, %v762_v30 }
 0xed9   :  { %v767_v48 = vsel %vm766_vm4, %v1583_v41, %v763_v31 }
 0xeda   :  { %v772_v54 = vsel %vm769_vm5, %v771_v49, %v767_v48 }
 0xedb   :  { %v780_v55 = vmul.f32 %v778_v50, %v772_v54  ;;  %v775_v9 = vmul.f32 0.0, %v772_v54 }
 0xf34   :  { %v600_v44 = vpop.f32.mrf.mxu0 }
 0xf35   :  { %v603_v34 = vadd.f32 %v600_v44, %v1782_v52 }
 0xf37   :  { %1584 = vtanh.f32 %v603_v34  ;;  %v1487_v52 = vmul.f32 -1.442695, %v603_v34 }
 0xf39   :  { %1586 = vpow2.f32 %v1487_v52 }
 0xf3c   :  { %v809_v25 = vpop.f32.mrf.mxu0 }
 0xf3d   :  { %v1585_v32 = vpop.eup %1584  ;;  %v810_v26 = vadd.f32 %v1884_v23, %v809_v25 }
 0xf3e   :  { %626 = vrot.lane.b32.xlu0 %v1585_v32, %s1741_s0 }
 0xf3f   :  { %v1587_v56 = vpop.eup %1586 }
 0xf40   :  { %v607_v57 = vadd.f32 1.0, %v1587_v56 }
 0xf42   :  { %1588 = vrcp.f32 %v607_v57  ;;  %v619_v62 = vand.u32 2147483648, %v607_v57  ;;  %vm613_vm7 = vweird.f32 %v607_v57  ;;  %v617_v3 = vand.u32 2147483647, %v607_v57 }
 0xf44   :  { %v620_v5 = vor.u32 1.1754944e-38, %v619_v62  ;;  %vm618_vm9 = vcmp.eq.f32.partialorder %v617_v3, 8.507059e+37 }
 0xf46   :  { %782 = vrot.lane.b32.xlu0 %v780_v55, %s1741_s0  ;;  %v892_v55 = vpop.f32.mrf.mxu1 }
 0xf47   :  { %v893_v52 = vadd.f32 %v1884_v23, %v892_v55 }
 0xf48   :  { %v1589_v46 = vpop.eup %1588 }
 0xf49   :  { %v609_v58 = vmul.f32 %v1589_v46, %v607_v57  ;;  %vm614_vm6 = vweird.f32 %v1589_v46 }
 0xf4a   :  { %vm615_vm8 = vmor %vm613_vm7, %vm614_vm6 }
 0xf4b   :  { %v610_v59 = vsub.f32 1.0, %v609_v58 }
 0xf4d   :  { %v611_v60 = vmul.f32 %v1589_v46, %v610_v59 }
 0xf4f   :  { %v612_v61 = vadd.f32 %v1589_v46, %v611_v60 }
 0xf51   :  { %v616_v4 = vsel %vm615_vm8, %v1589_v46, %v612_v61 }
 0xf52   :  { %v621_v7 = vsel %vm618_vm9, %v620_v5, %v616_v4 }
 0xf53   :  { %v624_v13 = vmul.f32 %v621_v7, %v1886_v24 }
 0xfb0   :  { %v627_v6 = vpop.permute.xlu0 %626 }
 0xfb1   :  { %v629_v8 = vmul.f32 %v627_v6, %v621_v7 }
 0xfb3   :  { %631 = vrot.lane.b32.xlu2 %v629_v8, %s1741_s0 }
 0xfb8   :  { %v783_v17 = vpop.permute.xlu0 %782 }
 0xfb9   :  { %v785_v10 = vadd.f32 %v783_v17, %v775_v9 }
 0xfbb   :  { %1590 = vtanh.f32 %v785_v10 }
 0xfc1   :  { %v1591_v11 = vpop.eup %1590 }
 0xfc2   :  { %788 = vrot.lane.b32.xlu2 %v1591_v11, %s1741_s0 }
0x100d   :  { %v632_v14 = vpop.permute.xlu2 %631 }
0x100e   :  { %v1917_v15 = vadd.f32 %v632_v14, %v624_v13 }
0x1010   :  { %1592 = vtanh.f32 %v1917_v15 }
0x1016   :  { %v1593_v16 = vpop.eup %1592 }
0x1017   :  { %637 = vrot.lane.b32.xlu1 %v1593_v16, %s1741_s0 }
0x101c   :  { %v789_v51 = vpop.permute.xlu2 %788 }
0x101d   :  { %v791_v18 = vmul.f32 %v789_v51, %v772_v54 }
0x101f   :  { %813 = vrot.lane.b32.xlu1 %v791_v18, %s1742_s1 }
0x1089   :  { %v638_v19 = vpop.permute.xlu1 %637 }
0x108a   :  { %v640_v47 = vmul.f32 %v638_v19, %v621_v7 }
0x108c   :  { %642 = vrot.lane.b32.xlu0 %v640_v47, %s1742_s1 }
0x1091   :  { %v814_v21 = vpop.permute.xlu1 %813 }
0x10fe   :  { %v643_v20 = vpop.permute.xlu0 %642 }
0x10ff   :  { %1488 = vmatmul.msk.f32.vlgmr.msra.gmra.mxu2 %vm201_vm10, %v643_v20  ;;  %1507 = vmatmul.msk.f32.vlgmr.msrb.gmra.mxu1 %vm201_vm10, %v643_v20  ;;  %v975_v20 = vpop.f32.mrf.mxu0 }
0x1100   :  { %995 = vmatpush.msra.mxu2 %v1854_v63 }
0x1102   :  { %996 = vmatpush.msra.mxu2 %v1856_v0 }
0x1104   :  { %997 = vmatpush.msra.mxu2 %v1860_v1 }
0x1106   :  { %998 = vmatpush.msra.mxu2 %v1864_v2 }
0x1107   :  { %1493 = vmatmul.msk.f32.vlgmr.msrb.gmra.mxu2 %vm201_vm10, %v814_v21  ;;  %v976_v21 = vadd.f32 %v1884_v23, %v975_v20 }
0x1108   :  { %1161 = vmatpush.msrb.mxu2 %v1854_v63 }
0x110a   :  { %1162 = vmatpush.msrb.mxu2 %v1856_v0 }
0x110c   :  { %1163 = vmatpush.msrb.mxu2 %v1860_v1 }
0x110e   :  { %1164 = vmatpush.msrb.mxu2 %v1864_v2 }
0x1182   :  { %v663_v22 = vpop.f32.mrf.mxu2 }
0x1183   :  { %v1935_v24 = vadd.f32 %v663_v22, %v1785_v53 }
0x118a   :  { %v834_v27 = vpop.f32.mrf.mxu2 }
0x118b   :  { %v837_v28 = vadd.f32 %v834_v27, %v810_v26 }
0x118d   :  { %1594 = vtanh.f32 %v837_v28  ;;  %v1494_v35 = vmul.f32 -1.442695, %v837_v28 }
0x118f   :  { %1596 = vpow2.f32 %v1494_v35 }
0x1193   :  { %v1595_v29 = vpop.eup %1594 }
0x1194   :  { %860 = vrot.lane.b32.xlu2 %v1595_v29, %s1741_s0 }
0x1195   :  { %v1597_v12 = vpop.eup %1596 }
0x1196   :  { %v841_v36 = vadd.f32 1.0, %v1597_v12 }
0x1198   :  { %1598 = vrcp.f32 %v841_v36  ;;  %v853_v41 = vand.u32 2147483648, %v841_v36  ;;  %vm847_vm12 = vweird.f32 %v841_v36  ;;  %v851_v42 = vand.u32 2147483647, %v841_v36 }
0x119a   :  { %v854_v44 = vor.u32 1.1754944e-38, %v853_v41  ;;  %vm852_vm14 = vcmp.eq.f32.partialorder %v851_v42, 8.507059e+37 }
0x119e   :  { %v1599_v37 = vpop.eup %1598 }
0x119f   :  { %v843_v38 = vmul.f32 %v1599_v37, %v841_v36  ;;  %vm848_vm11 = vweird.f32 %v1599_v37 }
0x11a0   :  { %vm849_vm13 = vmor %vm847_vm12, %vm848_vm11 }
0x11a1   :  { %v844_v39 = vsub.f32 1.0, %v843_v38 }
0x11a3   :  { %v845_v40 = vmul.f32 %v1599_v37, %v844_v39 }
0x11a5   :  { %v846_v53 = vadd.f32 %v1599_v37, %v845_v40 }
0x11a7   :  { %v850_v43 = vsel %vm849_vm13, %v1599_v37, %v846_v53 }
0x11a8   :  { %v855_v30 = vsel %vm852_vm14, %v854_v44, %v850_v43 }
0x11a9   :  { %v858_v32 = vmul.f32 %v855_v30, %v785_v10 }
0x11ee   :  { %v861_v34 = vpop.permute.xlu2 %860 }
0x11ef   :  { %v863_v31 = vmul.f32 %v861_v34, %v855_v30 }
0x11f1   :  { %865 = vrot.lane.b32.xlu0 %v863_v31, %s1741_s0 }
0x1263   :  { %v866_v45 = vpop.permute.xlu0 %865 }
0x1264   :  { %v868_v33 = vadd.f32 %v866_v45, %v858_v32  ;;  %v1058_v32 = vpop.f32.mrf.mxu1 }
0x1265   :  { %v1059_v45 = vadd.f32 %v1884_v23, %v1058_v32 }
0x1266   :  { %1600 = vtanh.f32 %v868_v33 }
0x126c   :  { %v1601_v48 = vpop.eup %1600 }
0x126d   :  { %871 = vrot.lane.b32.xlu1 %v1601_v48, %s1741_s0 }
0x12df   :  { %v872_v49 = vpop.permute.xlu1 %871 }
0x12e0   :  { %v874_v50 = vmul.f32 %v872_v49, %v855_v30 }
0x12e2   :  { %896 = vrot.lane.b32.xlu2 %v874_v50, %s1742_s1 }
0x133c   :  { %v897_v54 = vpop.permute.xlu2 %896 }
0x133d   :  { %1496 = vmatmul.msk.f32.vlgmr.msrb.gmra.mxu3 %vm201_vm10, %v897_v54 }
0x133e   :  { %1244 = vmatpush.msrb.mxu3 %v1854_v63 }
0x1340   :  { %1245 = vmatpush.msrb.mxu3 %v1856_v0 }
0x1342   :  { %1246 = vmatpush.msrb.mxu3 %v1860_v1 }
0x1344   :  { %1247 = vmatpush.msrb.mxu3 %v1864_v2 }
0x13c0   :  { %v917_v56 = vpop.f32.mrf.mxu3 }
0x13c1   :  { %v920_v57 = vadd.f32 %v917_v56, %v893_v52 }
0x13c3   :  { %1602 = vtanh.f32 %v920_v57  ;;  %v1497_v58 = vmul.f32 -1.442695, %v920_v57 }
0x13c5   :  { %1604 = vpow2.f32 %v1497_v58 }
0x13c9   :  { %v1603_v46 = vpop.eup %1602 }
0x13ca   :  { %943 = vrot.lane.b32.xlu0 %v1603_v46, %s1741_s0 }
0x13cb   :  { %v1605_v59 = vpop.eup %1604 }
0x13cc   :  { %v924_v60 = vadd.f32 1.0, %v1605_v59 }
0x13ce   :  { %1606 = vrcp.f32 %v924_v60  ;;  %v936_v6 = vand.u32 2147483648, %v924_v60  ;;  %vm930_vm0 = vweird.f32 %v924_v60  ;;  %v934_v7 = vand.u32 2147483647, %v924_v60 }
0x13d0   :  { %v937_v9 = vor.u32 1.1754944e-38, %v936_v6  ;;  %vm935_vm2 = vcmp.eq.f32.partialorder %v934_v7, 8.507059e+37 }
0x13d4   :  { %v1607_v61 = vpop.eup %1606 }
0x13d5   :  { %v926_v62 = vmul.f32 %v1607_v61, %v924_v60  ;;  %vm931_vm15 = vweird.f32 %v1607_v61 }
0x13d6   :  { %vm932_vm1 = vmor %vm930_vm0, %vm931_vm15 }
0x13d7   :  { %v927_v3 = vsub.f32 1.0, %v926_v62 }
0x13d9   :  { %v928_v4 = vmul.f32 %v1607_v61, %v927_v3 }
0x13db   :  { %v929_v5 = vadd.f32 %v1607_v61, %v928_v4 }
0x13dd   :  { %v933_v8 = vsel %vm932_vm1, %v1607_v61, %v929_v5 }
0x13de   :  { %v938_v10 = vsel %vm935_vm2, %v937_v9, %v933_v8 }
0x13df   :  { %v941_v13 = vmul.f32 %v938_v10, %v868_v33 }
0x143c   :  { %v944_v17 = vpop.permute.xlu0 %943 }
0x143d   :  { %v946_v11 = vmul.f32 %v944_v17, %v938_v10 }
0x143f   :  { %948 = vrot.lane.b32.xlu1 %v946_v11, %s1741_s0 }
0x14b1   :  { %v949_v14 = vpop.permute.xlu1 %948 }
0x14b2   :  { %v951_v16 = vadd.f32 %v949_v14, %v941_v13  ;;  %v1141_v13 = vpop.f32.mrf.mxu0 }
0x14b3   :  { %v1142_v14 = vadd.f32 %v1884_v23, %v1141_v13 }
0x14b4   :  { %1608 = vtanh.f32 %v951_v16 }
0x14ba   :  { %v1609_v51 = vpop.eup %1608 }
0x14bb   :  { %954 = vrot.lane.b32.xlu2 %v1609_v51, %s1741_s0 }
0x1515   :  { %v955_v18 = vpop.permute.xlu2 %954 }
0x1516   :  { %v957_v19 = vmul.f32 %v955_v18, %v938_v10 }
0x1518   :  { %979 = vrot.lane.b32.xlu0 %v957_v19, %s1742_s1 }
0x158a   :  { %v980_v47 = vpop.permute.xlu0 %979 }
0x158b   :  { %1499 = vmatmul.msk.f32.vlgmr.msra.gmra.mxu2 %vm201_vm10, %v980_v47 }
0x158c   :  { %1332 = vmatpush.msra.mxu2 %v1854_v63 }
0x158e   :  { %1333 = vmatpush.msra.mxu2 %v1856_v0 }
0x1590   :  { %1334 = vmatpush.msra.mxu2 %v1860_v1 }
0x1592   :  { %1335 = vmatpush.msra.mxu2 %v1864_v2 }
0x160e   :  { %v1000_v22 = vpop.f32.mrf.mxu2 }
0x160f   :  { %v1003_v25 = vadd.f32 %v1000_v22, %v976_v21 }
0x1611   :  { %1610 = vtanh.f32 %v1003_v25  ;;  %v1500_v27 = vmul.f32 -1.442695, %v1003_v25 }
0x1613   :  { %1612 = vpow2.f32 %v1500_v27 }
0x1617   :  { %v1611_v26 = vpop.eup %1610 }
0x1618   :  { %1026 = vrot.lane.b32.xlu1 %v1611_v26, %s1741_s0 }
0x1619   :  { %v1613_v28 = vpop.eup %1612 }
0x161a   :  { %v1007_v29 = vadd.f32 1.0, %v1613_v28 }
0x161c   :  { %1614 = vrcp.f32 %v1007_v29  ;;  %v1019_v2 = vand.u32 2147483648, %v1007_v29  ;;  %vm1013_vm5 = vweird.f32 %v1007_v29  ;;  %v1017_v36 = vand.u32 2147483647, %v1007_v29 }
0x161e   :  { %v1020_v38 = vor.u32 1.1754944e-38, %v1019_v2  ;;  %vm1018_vm7 = vcmp.eq.f32.partialorder %v1017_v36, 8.507059e+37 }
0x1622   :  { %v1615_v63 = vpop.eup %1614 }
0x1623   :  { %v1009_v0 = vmul.f32 %v1615_v63, %v1007_v29  ;;  %vm1014_vm4 = vweird.f32 %v1615_v63 }
0x1624   :  { %vm1015_vm6 = vmor %vm1013_vm5, %vm1014_vm4 }
0x1625   :  { %v1010_v35 = vsub.f32 1.0, %v1009_v0 }
0x1627   :  { %v1011_v1 = vmul.f32 %v1615_v63, %v1010_v35 }
0x1629   :  { %v1012_v12 = vadd.f32 %v1615_v63, %v1011_v1 }
0x162b   :  { %v1016_v37 = vsel %vm1015_vm6, %v1615_v63, %v1012_v12 }
0x162c   :  { %v1021_v40 = vsel %vm1018_vm7, %v1020_v38, %v1016_v37 }
0x162d   :  { %v1024_v41 = vmul.f32 %v1021_v40, %v951_v16 }
0x168a   :  { %v1027_v39 = vpop.permute.xlu1 %1026 }
0x168b   :  { %v1029_v53 = vmul.f32 %v1027_v39, %v1021_v40 }
0x168d   :  { %1031 = vrot.lane.b32.xlu2 %v1029_v53, %s1741_s0 }
0x16e7   :  { %v1032_v42 = vpop.permute.xlu2 %1031 }
0x16e8   :  { %v1034_v43 = vadd.f32 %v1032_v42, %v1024_v41  ;;  %v1489_v42 = vmul.f32 -1.442695, %v1935_v24 }
0x16ea   :  { %1616 = vtanh.f32 %v1034_v43 }
0x16f0   :  { %v1617_v44 = vpop.eup %1616 }
0x16f1   :  { %1037 = vrot.lane.b32.xlu0 %v1617_v44, %s1741_s0 }
0x1763   :  { %v1038_v34 = vpop.permute.xlu0 %1037 }
0x1764   :  { %v1040_v30 = vmul.f32 %v1038_v34, %v1021_v40 }
0x1766   :  { %1062 = vrot.lane.b32.xlu1 %v1040_v30, %s1742_s1  ;;  %v1224_v30 = vpop.f32.mrf.mxu1 }
0x1767   :  { %v1225_v32 = vadd.f32 %v1884_v23, %v1224_v30 }
0x17d8   :  { %v1063_v31 = vpop.permute.xlu1 %1062 }
0x17d9   :  { %1502 = vmatmul.msk.f32.vlgmr.msra.gmra.mxu3 %vm201_vm10, %v1063_v31 }
0x185c   :  { %v1083_v33 = vpop.f32.mrf.mxu3 }
0x185d   :  { %v1086_v48 = vadd.f32 %v1083_v33, %v1059_v45 }
0x185f   :  { %1618 = vtanh.f32 %v1086_v48  ;;  %v1503_v50 = vmul.f32 -1.442695, %v1086_v48 }
0x1861   :  { %1620 = vpow2.f32 %v1503_v50 }
0x1865   :  { %v1619_v49 = vpop.eup %1618 }
0x1866   :  { %1109 = vrot.lane.b32.xlu2 %v1619_v49, %s1741_s0 }
0x1867   :  { %v1621_v54 = vpop.eup %1620 }
0x1868   :  { %v1090_v55 = vadd.f32 1.0, %v1621_v54 }
0x186a   :  { %1622 = vrcp.f32 %v1090_v55  ;;  %v1102_v59 = vand.u32 2147483648, %v1090_v55  ;;  %vm1096_vm9 = vweird.f32 %v1090_v55  ;;  %v1100_v60 = vand.u32 2147483647, %v1090_v55 }
0x186c   :  { %v1103_v62 = vor.u32 1.1754944e-38, %v1102_v59  ;;  %vm1101_vm12 = vcmp.eq.f32.partialorder %v1100_v60, 8.507059e+37 }
0x1870   :  { %v1623_v52 = vpop.eup %1622 }
0x1871   :  { %v1092_v56 = vmul.f32 %v1623_v52, %v1090_v55  ;;  %vm1097_vm8 = vweird.f32 %v1623_v52 }
0x1872   :  { %vm1098_vm11 = vmor %vm1096_vm9, %vm1097_vm8 }
0x1873   :  { %v1093_v57 = vsub.f32 1.0, %v1092_v56 }
0x1875   :  { %v1094_v46 = vmul.f32 %v1623_v52, %v1093_v57 }
0x1877   :  { %v1095_v58 = vadd.f32 %v1623_v52, %v1094_v46 }
0x1879   :  { %v1099_v61 = vsel %vm1098_vm11, %v1623_v52, %v1095_v58 }
0x187a   :  { %v1104_v4 = vsel %vm1101_vm12, %v1103_v62, %v1099_v61 }
0x187b   :  { %v1107_v6 = vmul.f32 %v1104_v4, %v1034_v43 }
0x18c0   :  { %v1110_v3 = vpop.permute.xlu2 %1109 }
0x18c1   :  { %v1112_v5 = vmul.f32 %v1110_v3, %v1104_v4 }
0x18c3   :  { %1114 = vrot.lane.b32.xlu0 %v1112_v5, %s1741_s0 }
0x1935   :  { %v1115_v7 = vpop.permute.xlu0 %1114 }
0x1936   :  { %v1117_v8 = vadd.f32 %v1115_v7, %v1107_v6 }
0x1938   :  { %1624 = vtanh.f32 %v1117_v8 }
0x193e   :  { %v1625_v9 = vpop.eup %1624 }
0x193f   :  { %1120 = vrot.lane.b32.xlu1 %v1625_v9, %s1741_s0 }
0x19b1   :  { %v1121_v17 = vpop.permute.xlu1 %1120 }
0x19b2   :  { %v1123_v10 = vmul.f32 %v1121_v17, %v1104_v4 }
0x19b4   :  { %1145 = vrot.lane.b32.xlu2 %v1123_v10, %s1742_s1 }
0x1a0e   :  { %v1146_v11 = vpop.permute.xlu2 %1145 }
0x1a0f   :  { %1505 = vmatmul.msk.f32.vlgmr.msrb.gmra.mxu2 %vm201_vm10, %v1146_v11 }
0x1a92   :  { %v1166_v16 = vpop.f32.mrf.mxu2 }
0x1a93   :  { %v1169_v51 = vadd.f32 %v1166_v16, %v1142_v14 }
0x1a95   :  { %1626 = vtanh.f32 %v1169_v51  ;;  %v1506_v19 = vmul.f32 -1.442695, %v1169_v51 }
0x1a97   :  { %1628 = vpow2.f32 %v1506_v19 }
0x1a9b   :  { %v1627_v18 = vpop.eup %1626 }
0x1a9c   :  { %1192 = vrot.lane.b32.xlu0 %v1627_v18, %s1741_s0 }
0x1a9d   :  { %v1629_v47 = vpop.eup %1628 }
0x1a9e   :  { %v1173_v20 = vadd.f32 1.0, %v1629_v47 }
0x1aa0   :  { %1630 = vrcp.f32 %v1173_v20  ;;  %v1185_v28 = vand.u32 2147483648, %v1173_v20  ;;  %vm1179_vm14 = vweird.f32 %v1173_v20  ;;  %v1183_v29 = vand.u32 2147483647, %v1173_v20 }
0x1aa2   :  { %v1186_v0 = vor.u32 1.1754944e-38, %v1185_v28  ;;  %vm1184_vm0 = vcmp.eq.f32.partialorder %v1183_v29, 8.507059e+37 }
0x1aa6   :  { %v1631_v21 = vpop.eup %1630 }
0x1aa7   :  { %v1175_v22 = vmul.f32 %v1631_v21, %v1173_v20  ;;  %vm1180_vm13 = vweird.f32 %v1631_v21 }
0x1aa8   :  { %vm1181_vm15 = vmor %vm1179_vm14, %vm1180_vm13 }
0x1aa9   :  { %v1176_v25 = vsub.f32 1.0, %v1175_v22 }
0x1aab   :  { %v1177_v26 = vmul.f32 %v1631_v21, %v1176_v25 }
0x1aad   :  { %v1178_v27 = vadd.f32 %v1631_v21, %v1177_v26 }
0x1aaf   :  { %v1182_v63 = vsel %vm1181_vm15, %v1631_v21, %v1178_v27  ;;  %vm1420_vm15 = vcmask 408576  }
0x1ab0   :  { %v1187_v1 = vsel %vm1184_vm0, %v1186_v0, %v1182_v63 }
0x1ab1   :  { %v1190_v2 = vmul.f32 %v1187_v1, %v1117_v8 }
0x1b0e   :  { %v1193_v35 = vpop.permute.xlu0 %1192 }
0x1b0f   :  { %v1195_v12 = vmul.f32 %v1193_v35, %v1187_v1 }
0x1b11   :  { %1197 = vrot.lane.b32.xlu1 %v1195_v12, %s1741_s0 }
0x1b83   :  { %v1198_v36 = vpop.permute.xlu1 %1197 }
0x1b84   :  { %v1972_v37 = vadd.f32 %v1198_v36, %v1190_v2 }
0x1b86   :  { %1632 = vtanh.f32 %v1972_v37 }
0x1b87   :  { %1634 = vtanh.f32 %v1935_v24 }
0x1b88   :  { %1636 = vpow2.f32 %v1489_v42 }
0x1b8c   :  { %v1633_v38 = vpop.eup %1632 }
0x1b8d   :  { %1203 = vrot.lane.b32.xlu2 %v1633_v38, %s1741_s0  ;;  %v1635_v39 = vpop.eup %1634 }
0x1b8e   :  { %v1637_v43 = vpop.eup %1636 }
0x1b8f   :  { %v670_v44 = vadd.f32 1.0, %v1637_v43 }
0x1b91   :  { %1638 = vrcp.f32 %v670_v44  ;;  %v682_v55 = vand.u32 2147483648, %v670_v44  ;;  %vm676_vm2 = vweird.f32 %v670_v44  ;;  %v680_v24 = vand.u32 2147483647, %v670_v44 }
0x1b93   :  { %v683_v56 = vor.u32 1.1754944e-38, %v682_v55  ;;  %vm681_vm5 = vcmp.eq.f32.partialorder %v680_v24, 8.507059e+37 }
0x1b95   :  { %689 = vrot.lane.b32.xlu2 %v1635_v39, %s1741_s0 }
0x1b97   :  { %v1639_v34 = vpop.eup %1638 }
0x1b98   :  { %v672_v31 = vmul.f32 %v1639_v34, %v670_v44  ;;  %vm677_vm1 = vweird.f32 %v1639_v34 }
0x1b99   :  { %vm678_vm4 = vmor %vm676_vm2, %vm677_vm1 }
0x1b9a   :  { %v673_v45 = vsub.f32 1.0, %v672_v31 }
0x1b9c   :  { %v674_v49 = vmul.f32 %v1639_v34, %v673_v45 }
0x1b9e   :  { %v675_v50 = vadd.f32 %v1639_v34, %v674_v49  ;;  %v1381_v49 = vld [vmem:[#allocation5 + $0xb0] sm:$0xff] }
0x1ba0   :  { %v679_v52 = vsel %vm678_vm4, %v1639_v34, %v675_v50  ;;  %v1380_v50 = vld [vmem:[#allocation5 + $0xa8] sm:$0xff] }
0x1ba1   :  { %v684_v46 = vsel %vm681_vm5, %v683_v56, %v679_v52  ;;  %v1417_v56 = vld [vmem:[#allocation5 + $0xf8] sm:$0x3] }
0x1ba2   :  { %v687_v14 = vmul.f32 %v684_v46, %v1917_v15  ;;  %1514 = vmatpush.msk.msra.mxu3 %vm135_vm3, %v1417_v56  ;;  %vm1447_vm3 = vcmask 25600  }
0x1be7   :  { %v1204_v40 = vpop.permute.xlu2 %1203 }
0x1be8   :  { %v1206_v53 = vmul.f32 %v1204_v40, %v1187_v1 }
0x1bea   :  { %1228 = vrot.lane.b32.xlu0 %v1206_v53, %s1742_s1 }
0x1bef   :  { %v690_v57 = vpop.permute.xlu2 %689 }
0x1bf0   :  { %v692_v58 = vmul.f32 %v690_v57, %v684_v46  ;;  %v1416_v57 = vld [vmem:[#allocation5 + $0xf0] sm:$0xff] }
0x1bf1   :  { %1437 = vmatpush.msra.mxu3 %v1416_v57 }
0x1c5c   :  { %v1229_v41 = vpop.permute.xlu0 %1228 }
0x1c5d   :  { %1508 = vmatmul.msk.f32.vlgmr.msrb.gmra.mxu3 %vm201_vm10, %v1229_v41 }
0x1ce0   :  { %v1249_v33 = vpop.f32.mrf.mxu3 }
0x1ce1   :  { %v1252_v48 = vadd.f32 %v1249_v33, %v1225_v32 }
0x1ce3   :  { %1640 = vtanh.f32 %v1252_v48  ;;  %v1509_v59 = vmul.f32 -1.442695, %v1252_v48  ;;  %v1382_v48 = vld [vmem:[#allocation5 + $0xb8] sm:$0xff] }
0x1ce4   :  { %1402 = vmatpush.msra.mxu1 %v1382_v48 }
0x1ce5   :  { %1642 = vpow2.f32 %v1509_v59 }
0x1ce6   :  { %1403 = vmatpush.msra.mxu1 %v1381_v49 }
0x1ce8   :  { %1404 = vmatpush.msra.mxu1 %v1380_v50 }
0x1ce9   :  { %v1641_v54 = vpop.eup %1640 }
0x1cea   :  { %1275 = vrot.lane.b32.xlu1 %v1641_v54, %s1741_s0  ;;  %v1379_v54 = vld [vmem:[#allocation5 + $0xa0] sm:$0xff] }
0x1ceb   :  { %v1643_v60 = vpop.eup %1642  ;;  %1405 = vmatpush.msra.mxu1 %v1379_v54 }
0x1cec   :  { %v1256_v61 = vadd.f32 1.0, %v1643_v60  ;;  %v1413_v60 = vld [vmem:[#allocation5 + $0xd8] sm:$0xff] }
0x1cee   :  { %1644 = vrcp.f32 %v1256_v61  ;;  %v1268_v7 = vand.u32 2147483648, %v1256_v61  ;;  %vm1262_vm7 = vweird.f32 %v1256_v61  ;;  %v1266_v8 = vand.u32 2147483647, %v1256_v61 }
0x1cf0   :  { %v1269_v17 = vor.u32 1.1754944e-38, %v1268_v7  ;;  %vm1267_vm9 = vcmp.eq.f32.partialorder %v1266_v8, 8.507059e+37  ;;  %v1529_v7 = vld [vmem:[#allocation5 + $0x100] ss:$0 sm:$0xff] }
0x1cf2   :  { %694 = vrot.lane.b32.xlu1 %v692_v58, %s1741_s0  ;;  %v1414_v58 = vld [vmem:[#allocation5 + $0xe0] sm:$0xff] }
0x1cf4   :  { %v1645_v62 = vpop.eup %1644 }
0x1cf5   :  { %v1258_v3 = vmul.f32 %v1645_v62, %v1256_v61  ;;  %vm1263_vm6 = vweird.f32 %v1645_v62  ;;  %v1412_v61 = vld [vmem:[#allocation5 + $0xd0] sm:$0xff] }
0x1cf6   :  { %vm1264_vm8 = vmor %vm1262_vm7, %vm1263_vm6 }
0x1cf7   :  { %v1259_v4 = vsub.f32 1.0, %v1258_v3  ;;  %v1528_v3 = vld [vmem:[#allocation5 + $0xc0] ss:$0 sm:$0xff] }
0x1cf9   :  { %v1260_v5 = vmul.f32 %v1645_v62, %v1259_v4 }
0x1cfb   :  { %v1261_v6 = vadd.f32 %v1645_v62, %v1260_v5 }
0x1cfd   :  { %v1265_v9 = vsel %vm1264_vm8, %v1645_v62, %v1261_v6  ;;  %v1411_v62 = vld [vmem:[#allocation5 + $0xc8] sm:$0xff] }
0x1cfe   :  { %v1270_v11 = vsel %vm1267_vm9, %v1269_v17, %v1265_v9 }
0x1cff   :  { %v1273_v19 = vmul.f32 %v1270_v11, %v1972_v37 }
0x1d5c   :  { %v1276_v10 = vpop.permute.xlu1 %1275 }
0x1d5d   :  { %v1278_v13 = vmul.f32 %v1276_v10, %v1270_v11 }
0x1d5f   :  { %1280 = vrot.lane.b32.xlu0 %v1278_v13, %s1741_s0 }
0x1d64   :  { %v695_v16 = vpop.permute.xlu1 %694 }
0x1d65   :  { %v697_v51 = vadd.f32 %v695_v16, %v687_v14 }
0x1d67   :  { %1646 = vtanh.f32 %v697_v51 }
0x1d6d   :  { %v1647_v18 = vpop.eup %1646 }
0x1d6e   :  { %700 = vrot.lane.b32.xlu0 %v1647_v18, %s1741_s0 }
0x1dd1   :  { %v1281_v47 = vpop.permute.xlu0 %1280 }
0x1dd2   :  { %v1283_v20 = vadd.f32 %v1281_v47, %v1273_v19 }
0x1dd4   :  { %1648 = vtanh.f32 %v1283_v20 }
0x1dda   :  { %v1649_v21 = vpop.eup %1648 }
0x1ddb   :  { %1286 = vrot.lane.b32.xlu2 %v1649_v21, %s1741_s0 }
0x1de0   :  { %v701_v22 = vpop.permute.xlu0 %700 }
0x1de1   :  { %v703_v25 = vmul.f32 %v701_v22, %v684_v46  ;;  %v1415_v46 = vld [vmem:[#allocation5 + $0xe8] sm:$0xff] }
0x1de2   :  { %1438 = vmatpush.msra.mxu3 %v1415_v46 }
0x1de3   :  { %1291 = vrot.lane.b32.xlu2 %v703_v25, %s1742_s1 }
0x1de4   :  { %1439 = vmatpush.msra.mxu3 %v1414_v58 }
0x1de6   :  { %1440 = vmatpush.msra.mxu3 %v1413_v60 }
0x1de8   :  { %1441 = vmatpush.msra.mxu3 %v1412_v61 }
0x1dea   :  { %1442 = vmatpush.msra.mxu3 %v1411_v62 }
0x1e35   :  { %v1287_v26 = vpop.permute.xlu2 %1286 }
0x1e36   :  { %v1289_v15 = vmul.f32 %v1287_v26, %v1270_v11 }
0x1e38   :  { %1316 = vrot.lane.b32.xlu1 %v1289_v15, %s1742_s1 }
0x1e3d   :  { %v1292_v27 = vpop.permute.xlu2 %1291 }
0x1e3e   :  { %1510 = vmatmul.msk.f32.vlgmr.msrb.gmra.mxu0 %vm201_vm10, %v1292_v27 }
0x1eaa   :  { %v1317_v28 = vpop.permute.xlu1 %1316 }
0x1eab   :  { %1511 = vmatmul.msk.f32.vlgmr.msra.gmra.mxu2 %vm201_vm10, %v1317_v28 }
0x1ebb   :  { %v1312_v29 = vpop.f32.mrf.mxu0 }
0x1ebc   :  { %v1313_v63 = vadd.f32 %v1884_v23, %v1312_v29 }
0x1f2e   :  { %v1337_v0 = vpop.f32.mrf.mxu2 }
0x1f2f   :  { %v1340_v35 = vadd.f32 %v1337_v0, %v1313_v63 }
0x1f31   :  { %1650 = vtanh.f32 %v1340_v35  ;;  %v1512_v12 = vmul.f32 -1.442695, %v1340_v35 }
0x1f33   :  { %1652 = vpow2.f32 %v1512_v12 }
0x1f37   :  { %v1651_v1 = vpop.eup %1650 }
0x1f38   :  { %1363 = vrot.lane.b32.xlu0 %v1651_v1, %s1741_s0 }
0x1f39   :  { %v1653_v2 = vpop.eup %1652 }
0x1f3a   :  { %v1344_v36 = vadd.f32 1.0, %v1653_v2 }
0x1f3c   :  { %1654 = vrcp.f32 %v1344_v36  ;;  %v1356_v41 = vand.u32 2147483648, %v1344_v36  ;;  %vm1350_vm12 = vweird.f32 %v1344_v36  ;;  %v1354_v23 = vand.u32 2147483647, %v1344_v36 }
0x1f3e   :  { %v1357_v43 = vor.u32 1.1754944e-38, %v1356_v41  ;;  %vm1355_vm14 = vcmp.eq.f32.partialorder %v1354_v23, 8.507059e+37 }
0x1f42   :  { %v1655_v37 = vpop.eup %1654 }
0x1f43   :  { %v1346_v38 = vmul.f32 %v1655_v37, %v1344_v36  ;;  %vm1351_vm11 = vweird.f32 %v1655_v37 }
0x1f44   :  { %vm1352_vm13 = vmor %vm1350_vm12, %vm1351_vm11 }
0x1f45   :  { %v1347_v39 = vsub.f32 1.0, %v1346_v38 }
0x1f47   :  { %v1348_v40 = vmul.f32 %v1655_v37, %v1347_v39 }
0x1f49   :  { %v1349_v53 = vadd.f32 %v1655_v37, %v1348_v40 }
0x1f4b   :  { %v1353_v42 = vsel %vm1352_vm13, %v1655_v37, %v1349_v53 }
0x1f4c   :  { %v1358_v34 = vsel %vm1355_vm14, %v1357_v43, %v1353_v42 }
0x1f4d   :  { %v1361_v31 = vmul.f32 %v1358_v34, %v1283_v20 }
0x1faa   :  { %v1364_v44 = vpop.permute.xlu0 %1363 }
0x1fab   :  { %v1366_v30 = vmul.f32 %v1364_v44, %v1358_v34 }
0x1fad   :  { %1368 = vrot.lane.b32.xlu1 %v1366_v30, %s1741_s0 }
0x201f   :  { %v1369_v32 = vpop.permute.xlu1 %1368 }
0x2020   :  { %v1371_v45 = vadd.f32 %v1369_v32, %v1361_v31 }
0x2022   :  { %1656 = vtanh.f32 %v1371_v45 }
0x2028   :  { %v1657_v33 = vpop.eup %1656 }
0x2029   :  { %1374 = vrot.lane.b32.xlu2 %v1657_v33, %s1741_s0 }
0x2083   :  { %v1375_v55 = vpop.permute.xlu2 %1374 }
0x2084   :  { %v1377_v24 = vmul.f32 %v1375_v55, %v1358_v34 }
0x2086   :  { %v1378_v52 = vmax.f32 %v1377_v24, 0.0 }
0x2088   :  { %1386 = vrot.lane.b32.xlu0 %v1378_v52, %s1742_s1 }
0x20fa   :  { %v1387_v59 = vpop.permute.xlu0 %1386 }
0x20fb   :  { %1513 = vmatmul.msk.f32.vlgmr.msra.gmra.mxu1 %vm201_vm10, %v1387_v59 }
0x2178   :  { %v1407_v4 = vpop.f32.mrf.mxu1 }
0x2179   :  { %v1408_v5 = vadd.f32 %v1528_v3, %v1407_v4 }
0x217b   :  { %v1410_v6 = vmax.f32 %v1408_v5, 0.0 }
0x217d   :  { %1515 = vmatmul.msk.f32.vlgmr.msra.gmra.mxu3 %vm1420_vm15, %v1410_v6 }
0x2200   :  { %v1444_v8 = vpop.f32.mrf.mxu3 }
0x2201   :  { %v1445_v9 = vadd.f32 %v1529_v7, %v1444_v8 }
0x2203   :  { %1448 = vst.msk [vmem:[#allocation7] sm:$0x3] %vm1447_vm3, %v1445_v9 }
0x2204   :  { %1459 = dma.vmem_to_hbm [thread:$0]  %s1455_s22, 32, %s1457_s25, [#allocation4]  }
0x2205   :  { %1734 = dma.done.wait [#allocation4], 32  }
0x2206   :  { %1735 = vsyncadd [#allocation4], 4294967264 }
0x2207   :  { %1464 = vsyncpa [#allocation3], 1 }
0x2208   :  { %1465 = vsyncpa [#allocation6], 1 }
0x2209   :  { %1466 = vsyncpa [#allocation4], 1 }

</bundles_post_ra>
